<compile_context>
chip_gen: v6e
topology: v6e:2x2x1
jax: 0.10.0
libtpu: 0.0.40
codegen_flags: <defaults>
</compile_context>

<pallas_src>
import functools

import jax
import jax.numpy as jnp
from jax import lax
from jax.experimental import pallas as pl
from jax.experimental.pallas import tpu as pltpu
import numpy as np


# ---------------------------------------------------------------------------
# One-time, host-side generation heuristics.
# ---------------------------------------------------------------------------
def _tpu_kind():
    try:
        return jax.devices()[0].device_kind.lower()
    except Exception:
        return ""


_KIND = _tpu_kind()
# v5e MXU native tile is 128x128; v6e/v7x MXUs are 256x256 -> a 256-lane group
# fills exactly one MXU weight tile.
_DESIRED_GROUP_LANES = 128 if (("v5e" in _KIND) or ("v5 lite" in _KIND)
                               or ("v5lite" in _KIND)) else 256
# ">=2 parallel grid steps" only pays off with >1 TensorCore per chip
# (v4/v5p megacore, v7x); on single-TC v5e/v6e it just doubles step overhead.
_PREFER_TWO_STEPS = any(s in _KIND for s in ("v4", "v5p", "v7"))


def _pick_group_lanes(W, C, desired):
    """Largest lane-group <= desired that (a) holds whole w positions
    (multiple of C), (b) tiles WC exactly, and (c) stays lane-tile aligned
    (multiple of 128).  Falls back to the full WC block-diagonal if none."""
    WC = W * C
    cands = [d for d in range(1, WC + 1)
             if WC % d == 0 and d % C == 0 and d % 128 == 0]
    if not cands:
        return WC   # TODO(synk): relayout-based 1x1 path for awkward C / W
    le = [d for d in cands if d <= desired]
    return max(le) if le else min(cands)


def _pick_bt(B, per_image_bytes, *, prefer_two_steps, target_bytes=2 << 20):
    """Pack images per grid step up to ~2 MiB input blocks; force >=2 grid
    steps only on multi-TensorCore generations (and only if B allows it)."""
    divisors = [d for d in range(1, B + 1) if B % d == 0]
    fits = [d for d in divisors if d * per_image_bytes <= target_bytes] or [1]
    bt = max(fits)
    if prefer_two_steps and B >= 2 and B // bt < 2:
        two = [d for d in fits if B // d >= 2]
        if two:
            bt = max(two)
    return bt


# ---------------------------------------------------------------------------
# Kernel: operates on a (R, W*C) slab, R = Bt*H rows, lanes = W*C (dense).
# ---------------------------------------------------------------------------
def depthwise_kernel(x_ref,      # (R, WC)   input rows
                     bdg_ref,    # (gC, gC)  grouped block-diag 1x1 weight (BN4 scale folded)
                     b4_ref,     # (1, WC)   BN4 bias, tiled over W
                     w2_ref,     # (5, WC)   depthwise 5x1 taps, BN2 scale folded, tiled
                     b2_ref,     # (1, WC)   BN2 bias, tiled
                     w3_ref,     # (5, WC)   depthwise 1x5 taps, BN3 scale + W-edge masks folded
                     b3_ref,     # (1, WC)   BN3 bias, tiled
                     o_ref,      # (R, WC)   output rows
                     *, H, C, gC):
    R, WC = x_ref.shape
    x = x_ref[...].astype(jnp.float32)
    bdg = bdg_ref[...]

    # ---- conv4: 1x1 pointwise (+ folded BN scale) as a chunked block-diag matmul.
    # Each lane chunk of width gC (one or more whole w positions) multiplies the
    # SAME (gC, gC) grouped weight -> no (WC)^2 constant, no wasted MXU MACs.
    nchunks = WC // gC
    if nchunks == 1:
        y = jnp.dot(x, bdg, preferred_element_type=jnp.float32)
    else:
        parts = []
        for j in range(nchunks):          # static, lane-tile-aligned slices
            xj = x[:, j * gC:(j + 1) * gC]
            parts.append(jnp.dot(xj, bdg, preferred_element_type=jnp.float32))
        y = jnp.concatenate(parts, axis=1)
    y = y + b4_ref[...]

    # ---- conv2: depthwise [5,1] along H == sublane rolls + row edge masks ----
    # (row masks depend on h, so they cannot be folded into the per-lane taps)
    h_idx = lax.broadcasted_iota(jnp.int32, (R, 1), 0) % H       # h of each row
    w2 = w2_ref[...]
    z = y * w2[2:3, :] + b2_ref[...]      # centre tap + bias init the accumulator
    for k, d in ((0, -2), (1, -1), (3, 1), (4, 2)):
        shifted = pltpu.roll(y, shift=(-d) % R, axis=0)          # shifted[r] = y[r + d]
        valid = (h_idx + d >= 0) & (h_idx + d < H)
        z = z + jnp.where(valid, shifted, 0.0) * w2[k:k + 1, :]

    # ---- conv3: depthwise [1,5] along W == lane rolls (by multiples of C) ----
    # W-edge masks are pre-folded into w3_ref on the host (zeroed taps), so the
    # wrapped-around lanes contribute exactly zero: no selects / iota needed.
    w3 = w3_ref[...]
    o = z * w3[2:3, :] + b3_ref[...]
    for k, d in ((0, -2), (1, -1), (3, 1), (4, 2)):
        shifted = pltpu.roll(z, shift=(-d * C) % WC, axis=1)     # shifted[., w] = z[., w + d]
        o = o + shifted * w3[k:k + 1, :]

    o_ref[...] = o.astype(o_ref.dtype)


# ---------------------------------------------------------------------------
# Host-side parameter prep (run ONCE, outside the per-call jit).
# ---------------------------------------------------------------------------
def prepare_kernel_consts(params, W, gC):
    (w4, s4, b4, w2, s2, b2, w3, s3, b3) = params
    C = w4.shape[0]
    WC = W * C
    g = gC // C
    # 1x1 conv: (co, ci) * s4[co] -> (ci, co); block-diagonal over g copies only.
    w4t_s = (w4 * s4[:, None]).T.astype(jnp.float32)                  # (ci, co)
    bdg = jnp.kron(jnp.eye(g, dtype=jnp.float32), w4t_s)              # (gC, gC)
    b4w = jnp.tile(b4, W).reshape(1, WC).astype(jnp.float32)
    # depthwise 5x1 taps: fold BN2 scale per channel, tile across W lanes.
    w2w = jnp.tile((w2 * s2[:, None]).T.astype(jnp.float32), (1, W))  # (5, WC)
    b2w = jnp.tile(b2, W).reshape(1, WC).astype(jnp.float32)
    # depthwise 1x5 taps: fold BN3 scale AND the static W-edge masks.
    w3w = jnp.tile((w3 * s3[:, None]).T.astype(jnp.float32), (1, W))  # (5, WC)
    w_of_lane = (jnp.arange(WC, dtype=jnp.int32) // C)[None, :]       # (1, WC)
    d_of_tap = (jnp.arange(5, dtype=jnp.int32) - 2)[:, None]          # (5, 1)
    valid = ((w_of_lane + d_of_tap) >= 0) & ((w_of_lane + d_of_tap) < W)
    w3w = jnp.where(valid, w3w, 0.0)
    b3w = jnp.tile(b3, W).reshape(1, WC).astype(jnp.float32)
    return bdg, b4w, w2w, b2w, w3w, b3w


def prepare_for_kernel(params, W, C):
    gC = _pick_group_lanes(W, C, _DESIRED_GROUP_LANES)
    consts = prepare_kernel_consts(params, W, gC)
    # Materialise once on device so every forward call reuses the same buffers.
    return tuple(jax.device_put(c) for c in consts)


# ---------------------------------------------------------------------------
# Fast entry point: NHWC, no HBM transposes (only free contiguous reshapes).
# ---------------------------------------------------------------------------
@jax.jit
def depthwise_forward_nhwc(x_nhwc, kconsts):
    B, H, W, C = x_nhwc.shape
    WC = W * C
    bdg, b4w, w2w, b2w, w3w, b3w = kconsts
    gC = bdg.shape[0]

    x2d = x_nhwc.reshape(B * H, WC)                              # free reshape

    bt = _pick_bt(B, H * WC * x_nhwc.dtype.itemsize,
                  prefer_two_steps=_PREFER_TWO_STEPS)
    rows = bt * H
    grid = (B // bt,)

    # Constants are small now (<= gC*gC*4 ~ 256 KiB + a few (5, WC)/(1, WC)
    # strips); default double-buffering of them is a negligible VMEM cost.
    const = lambda shape: pl.BlockSpec(shape, lambda i: (0, 0))
    kernel = functools.partial(depthwise_kernel, H=H, C=C, gC=gC)

    out2d = pl.pallas_call(
        kernel,
        out_shape=jax.ShapeDtypeStruct((B * H, WC), x_nhwc.dtype),
        grid_spec=pltpu.PrefetchScalarGridSpec(
            num_scalar_prefetch=0,
            grid=grid,
            in_specs=[
                pl.BlockSpec((rows, WC), lambda i: (i, 0)),      # x rows
                const((gC, gC)),                                 # grouped 1x1 weight
                const((1, WC)),                                  # b4
                const((5, WC)),                                  # conv2 taps
                const((1, WC)),                                  # b2
                const((5, WC)),                                  # conv3 taps (masked)
                const((1, WC)),                                  # b3
            ],
            out_specs=pl.BlockSpec((rows, WC), lambda i: (i, 0)),
        ),
        compiler_params=pltpu.CompilerParams(
            dimension_semantics=("parallel",),
        ),
    )(x2d, bdg, b4w, w2w, b2w, w3w, b3w)

    return out2d.reshape(B, H, W, C)                             # free reshape


def depthwise_forward(x_nchw, kconsts):
    """PyTorch-layout (NCHW) adapter.  In a real pipeline keep activations NHWC
    end-to-end and call depthwise_forward_nhwc directly (no HBM transposes)."""
    x_nhwc = jnp.transpose(x_nchw, (0, 2, 3, 1))
    out = depthwise_forward_nhwc(x_nhwc, kconsts)
    return jnp.transpose(out, (0, 3, 1, 2))


# ---------------------------------------------------------------------------
# Deterministic parameter construction (shapes follow the PyTorch module).
# ---------------------------------------------------------------------------
def make_params(key, C, eps=1e-5):
    ks = jax.random.split(key, 12)

    def bn_fold(kg, kb, km, kv):
        gamma = 1.0 + 0.1 * jax.random.normal(kg, (C,), jnp.float32)
        beta = 0.1 * jax.random.normal(kb, (C,), jnp.float32)
        mean = 0.1 * jax.random.normal(km, (C,), jnp.float32)
        var = jax.random.uniform(kv, (C,), jnp.float32, 0.5, 1.5)
        scale = gamma / jnp.sqrt(var + eps)
        bias = beta - mean * scale
        return scale, bias

    w4 = 0.1 * jax.random.normal(ks[0], (C, C), jnp.float32)   # conv4: (out,in) from (C,C,1,1)
    w2 = 0.1 * jax.random.normal(ks[1], (C, 5), jnp.float32)   # conv2: (C,1,5,1) -> (C,5)
    w3 = 0.1 * jax.random.normal(ks[2], (C, 5), jnp.float32)   # conv3: (C,1,1,5) -> (C,5)

    s4, b4 = bn_fold(ks[3], ks[4], ks[5], ks[6])
    s2, b2 = bn_fold(ks[7], ks[8], ks[9], ks[10])
    s3, b3 = bn_fold(ks[11], ks[3], ks[5], ks[7])
    return (w4, s4, b4, w2, s2, b2, w3, s3, b3)


# Pure-JAX (XLA conv) reference of the PyTorch forward, for validation.
def reference_forward(x_nchw, params):
    (w4, s4, b4, w2, s2, b2, w3, s3, b3) = params
    C = x_nchw.shape[1]
    dn = ('NCHW', 'OIHW', 'NCHW')
    pc = lambda v: v[None, :, None, None]

    y = lax.conv_general_dilated(x_nchw, w4.reshape(C, C, 1, 1), (1, 1),
                                 [(0, 0), (0, 0)], dimension_numbers=dn)
    y = y * pc(s4) + pc(b4)
    y = lax.conv_general_dilated(y, w2.reshape(C, 1, 5, 1), (1, 1),
                                 [(2, 2), (0, 0)], dimension_numbers=dn,
                                 feature_group_count=C)
    y = y * pc(s2) + pc(b2)
    y = lax.conv_general_dilated(y, w3.reshape(C, 1, 1, 5), (1, 1),
                                 [(0, 0), (2, 2)], dimension_numbers=dn,
                                 feature_group_count=C)
    y = y * pc(s3) + pc(b3)
    return y


if __name__ == "__main__":
    B, C, H, W = 2, 32, 16, 16
    key = jax.random.PRNGKey(0)
    kx, kp = jax.random.split(key)

    x_nhwc = jax.random.normal(kx, (B, H, W, C), jnp.float32)
    params = make_params(kp, C)

    # One-time constant preparation (BN folding, grouped 1x1 weight, tiled
    # taps/biases with conv3 edge masks folded) — hoisted out of the jit.
    kconsts = prepare_for_kernel(params, W=W, C=C)

    out_nhwc = jax.block_until_ready(depthwise_forward_nhwc(x_nhwc, kconsts))

    x_nchw = jnp.transpose(x_nhwc, (0, 3, 1, 2))
    ref_nchw = jax.block_until_ready(reference_forward(x_nchw, params))
    ref_nhwc = jnp.transpose(ref_nchw, (0, 2, 3, 1))

    np.testing.assert_allclose(np.asarray(out_nhwc), np.asarray(ref_nhwc),
                               rtol=1e-4, atol=1e-4)
    print("KERNEL_OK")
</pallas_src>

<mosaic_0001>
module attributes {stable_mosaic.version = 11 : i64} {
  func.func @depthwise_kernel(%arg0: i32, %arg1: memref<32x512xf32, #tpu.memory_space<vmem>>, %arg2: memref<256x256xf32, #tpu.memory_space<vmem>>, %arg3: memref<1x512xf32, #tpu.memory_space<vmem>>, %arg4: memref<5x512xf32, #tpu.memory_space<vmem>>, %arg5: memref<1x512xf32, #tpu.memory_space<vmem>>, %arg6: memref<5x512xf32, #tpu.memory_space<vmem>>, %arg7: memref<1x512xf32, #tpu.memory_space<vmem>>, %arg8: memref<32x512xf32, #tpu.memory_space<vmem>>) attributes {dimension_semantics = [#tpu.dimension_semantics<parallel>], iteration_bounds = array<i64: 1>, scalar_prefetch = 0 : i64, scratch_operands = 0 : i64, tpu.core_type = #tpu.core_type<tc>, window_params = [{transform_indices = @transform_0, window_bounds = array<i64: 32, 512>}, {pipeline_mode = #tpu.pipeline_mode<synchronous>, transform_indices = @transform_1, window_bounds = array<i64: 256, 256>}, {pipeline_mode = #tpu.pipeline_mode<synchronous>, transform_indices = @transform_2, window_bounds = array<i64: 1, 512>}, {pipeline_mode = #tpu.pipeline_mode<synchronous>, transform_indices = @transform_3, window_bounds = array<i64: 5, 512>}, {pipeline_mode = #tpu.pipeline_mode<synchronous>, transform_indices = @transform_4, window_bounds = array<i64: 1, 512>}, {pipeline_mode = #tpu.pipeline_mode<synchronous>, transform_indices = @transform_5, window_bounds = array<i64: 5, 512>}, {pipeline_mode = #tpu.pipeline_mode<synchronous>, transform_indices = @transform_6, window_bounds = array<i64: 1, 512>}, {transform_indices = @transform_7, window_bounds = array<i64: 32, 512>}]} {
    %c0 = arith.constant 0 : index
    %c0_0 = arith.constant 0 : index
    %0 = vector.load %arg1[%c0, %c0_0] : memref<32x512xf32, #tpu.memory_space<vmem>>, vector<32x512xf32>
    %c0_1 = arith.constant 0 : index
    %c0_2 = arith.constant 0 : index
    %1 = vector.load %arg2[%c0_1, %c0_2] : memref<256x256xf32, #tpu.memory_space<vmem>>, vector<256x256xf32>
    %2 = vector.extract_strided_slice %0 {offsets = [0, 0], sizes = [32, 256], strides = [1, 1]} : vector<32x512xf32> to vector<32x256xf32>
    %cst = arith.constant dense<0.000000e+00> : vector<32x256xf32>
    %3 = tpu.matmul %2, %1, %cst {dimension_numbers = #tpu.dot_dimension_numbers<[1], [0], [0], [1], [0, 0, 1, 1], [], []>} : vector<32x256xf32>, vector<256x256xf32>, vector<32x256xf32> -> vector<32x256xf32>
    %4 = vector.extract_strided_slice %0 {offsets = [0, 256], sizes = [32, 256], strides = [1, 1]} : vector<32x512xf32> to vector<32x256xf32>
    %cst_3 = arith.constant dense<0.000000e+00> : vector<32x256xf32>
    %5 = tpu.matmul %4, %1, %cst_3 {dimension_numbers = #tpu.dot_dimension_numbers<[1], [0], [0], [1], [0, 0, 1, 1], [], []>} : vector<32x256xf32>, vector<256x256xf32>, vector<32x256xf32> -> vector<32x256xf32>
    %6 = tpu.concatenate %3, %5 in 1 : vector<32x256xf32>, vector<32x256xf32> -> vector<32x512xf32>
    %c0_4 = arith.constant 0 : index
    %c0_5 = arith.constant 0 : index
    %7 = vector.load %arg3[%c0_4, %c0_5] : memref<1x512xf32, #tpu.memory_space<vmem>>, vector<1x512xf32>
    %8 = vector.broadcast %7 : vector<1x512xf32> to vector<32x512xf32>
    %9 = arith.addf %6, %8 : vector<32x512xf32>
    %10 = tpu.iota {dimensions = array<i32: 0>} : vector<32x1xi32>
    %c16_i32 = arith.constant 16 : i32
    %c0_i32 = arith.constant 0 : i32
    %11 = arith.cmpi eq, %c16_i32, %c0_i32 : i32
    %c1_i32 = arith.constant 1 : i32
    %12 = arith.select %11, %c1_i32, %c16_i32 : i32
    %13 = vector.broadcast %12 : i32 to vector<32x1xi32>
    %14 = arith.remsi %10, %13 : vector<32x1xi32>
    %c0_i32_6 = arith.constant 0 : i32
    %15 = vector.broadcast %c0_i32_6 : i32 to vector<32x1xi32>
    %16 = arith.cmpi ne, %14, %15 : vector<32x1xi32>
    %c0_i32_7 = arith.constant 0 : i32
    %17 = vector.broadcast %c0_i32_7 : i32 to vector<32x1xi32>
    %18 = arith.cmpi slt, %14, %17 : vector<32x1xi32>
    %c0_i32_8 = arith.constant 0 : i32
    %19 = arith.cmpi slt, %12, %c0_i32_8 : i32
    %20 = vector.broadcast %19 : i1 to vector<32x1xi1>
    %21 = vector.broadcast %20 : vector<32x1xi1> to vector<32x1xi1>
    %22 = arith.xori %18, %21 : vector<32x1xi1>
    %23 = arith.andi %22, %16 : vector<32x1xi1>
    %24 = vector.broadcast %12 : i32 to vector<32x1xi32>
    %25 = arith.addi %14, %24 : vector<32x1xi32>
    %26 = arith.select %23, %25, %14 : vector<32x1xi1>, vector<32x1xi32>
    %c0_9 = arith.constant 0 : index
    %c0_10 = arith.constant 0 : index
    %27 = vector.load %arg4[%c0_9, %c0_10] : memref<5x512xf32, #tpu.memory_space<vmem>>, vector<5x512xf32>
    %28 = vector.extract_strided_slice %27 {offsets = [2, 0], sizes = [1, 512], strides = [1, 1]} : vector<5x512xf32> to vector<1x512xf32>
    %29 = vector.broadcast %28 : vector<1x512xf32> to vector<32x512xf32>
    %30 = arith.mulf %9, %29 : vector<32x512xf32>
    %c0_11 = arith.constant 0 : index
    %c0_12 = arith.constant 0 : index
    %31 = vector.load %arg5[%c0_11, %c0_12] : memref<1x512xf32, #tpu.memory_space<vmem>>, vector<1x512xf32>
    %32 = vector.broadcast %31 : vector<1x512xf32> to vector<32x512xf32>
    %33 = arith.addf %30, %32 : vector<32x512xf32>
    %c2_i32 = arith.constant 2 : i32
    %34 = tpu.dynamic_rotate %9 by %c2_i32 dim 0 : vector<32x512xf32>, i32 -> vector<32x512xf32>
    %c-2_i32 = arith.constant -2 : i32
    %35 = vector.broadcast %c-2_i32 : i32 to vector<32x1xi32>
    %36 = arith.addi %26, %35 : vector<32x1xi32>
    %c0_i32_13 = arith.constant 0 : i32
    %37 = vector.broadcast %c0_i32_13 : i32 to vector<32x1xi32>
    %38 = arith.cmpi sge, %36, %37 : vector<32x1xi32>
    %c-2_i32_14 = arith.constant -2 : i32
    %39 = vector.broadcast %c-2_i32_14 : i32 to vector<32x1xi32>
    %40 = arith.addi %26, %39 : vector<32x1xi32>
    %c16_i32_15 = arith.constant 16 : i32
    %41 = vector.broadcast %c16_i32_15 : i32 to vector<32x1xi32>
    %42 = arith.cmpi slt, %40, %41 : vector<32x1xi32>
    %43 = arith.andi %38, %42 : vector<32x1xi1>
    %cst_16 = arith.constant 0.000000e+00 : f32
    %44 = vector.shape_cast %43 : vector<32x1xi1> to vector<32x1xi1>
    %45 = vector.broadcast %44 : vector<32x1xi1> to vector<32x512xi1>
    %46 = vector.broadcast %cst_16 : f32 to vector<32x512xf32>
    %47 = arith.select %45, %34, %46 : vector<32x512xi1>, vector<32x512xf32>
    %48 = vector.extract_strided_slice %27 {offsets = [0, 0], sizes = [1, 512], strides = [1, 1]} : vector<5x512xf32> to vector<1x512xf32>
    %49 = vector.broadcast %48 : vector<1x512xf32> to vector<32x512xf32>
    %50 = arith.mulf %47, %49 : vector<32x512xf32>
    %51 = arith.addf %33, %50 : vector<32x512xf32>
    %c1_i32_17 = arith.constant 1 : i32
    %52 = tpu.dynamic_rotate %9 by %c1_i32_17 dim 0 : vector<32x512xf32>, i32 -> vector<32x512xf32>
    %c-1_i32 = arith.constant -1 : i32
    %53 = vector.broadcast %c-1_i32 : i32 to vector<32x1xi32>
    %54 = arith.addi %26, %53 : vector<32x1xi32>
    %c0_i32_18 = arith.constant 0 : i32
    %55 = vector.broadcast %c0_i32_18 : i32 to vector<32x1xi32>
    %56 = arith.cmpi sge, %54, %55 : vector<32x1xi32>
    %c-1_i32_19 = arith.constant -1 : i32
    %57 = vector.broadcast %c-1_i32_19 : i32 to vector<32x1xi32>
    %58 = arith.addi %26, %57 : vector<32x1xi32>
    %c16_i32_20 = arith.constant 16 : i32
    %59 = vector.broadcast %c16_i32_20 : i32 to vector<32x1xi32>
    %60 = arith.cmpi slt, %58, %59 : vector<32x1xi32>
    %61 = arith.andi %56, %60 : vector<32x1xi1>
    %cst_21 = arith.constant 0.000000e+00 : f32
    %62 = vector.shape_cast %61 : vector<32x1xi1> to vector<32x1xi1>
    %63 = vector.broadcast %62 : vector<32x1xi1> to vector<32x512xi1>
    %64 = vector.broadcast %cst_21 : f32 to vector<32x512xf32>
    %65 = arith.select %63, %52, %64 : vector<32x512xi1>, vector<32x512xf32>
    %66 = vector.extract_strided_slice %27 {offsets = [1, 0], sizes = [1, 512], strides = [1, 1]} : vector<5x512xf32> to vector<1x512xf32>
    %67 = vector.broadcast %66 : vector<1x512xf32> to vector<32x512xf32>
    %68 = arith.mulf %65, %67 : vector<32x512xf32>
    %69 = arith.addf %51, %68 : vector<32x512xf32>
    %c31_i32 = arith.constant 31 : i32
    %70 = tpu.dynamic_rotate %9 by %c31_i32 dim 0 : vector<32x512xf32>, i32 -> vector<32x512xf32>
    %c1_i32_22 = arith.constant 1 : i32
    %71 = vector.broadcast %c1_i32_22 : i32 to vector<32x1xi32>
    %72 = arith.addi %26, %71 : vector<32x1xi32>
    %c0_i32_23 = arith.constant 0 : i32
    %73 = vector.broadcast %c0_i32_23 : i32 to vector<32x1xi32>
    %74 = arith.cmpi sge, %72, %73 : vector<32x1xi32>
    %c1_i32_24 = arith.constant 1 : i32
    %75 = vector.broadcast %c1_i32_24 : i32 to vector<32x1xi32>
    %76 = arith.addi %26, %75 : vector<32x1xi32>
    %c16_i32_25 = arith.constant 16 : i32
    %77 = vector.broadcast %c16_i32_25 : i32 to vector<32x1xi32>
    %78 = arith.cmpi slt, %76, %77 : vector<32x1xi32>
    %79 = arith.andi %74, %78 : vector<32x1xi1>
    %cst_26 = arith.constant 0.000000e+00 : f32
    %80 = vector.shape_cast %79 : vector<32x1xi1> to vector<32x1xi1>
    %81 = vector.broadcast %80 : vector<32x1xi1> to vector<32x512xi1>
    %82 = vector.broadcast %cst_26 : f32 to vector<32x512xf32>
    %83 = arith.select %81, %70, %82 : vector<32x512xi1>, vector<32x512xf32>
    %84 = vector.extract_strided_slice %27 {offsets = [3, 0], sizes = [1, 512], strides = [1, 1]} : vector<5x512xf32> to vector<1x512xf32>
    %85 = vector.broadcast %84 : vector<1x512xf32> to vector<32x512xf32>
    %86 = arith.mulf %83, %85 : vector<32x512xf32>
    %87 = arith.addf %69, %86 : vector<32x512xf32>
    %c30_i32 = arith.constant 30 : i32
    %88 = tpu.dynamic_rotate %9 by %c30_i32 dim 0 : vector<32x512xf32>, i32 -> vector<32x512xf32>
    %c2_i32_27 = arith.constant 2 : i32
    %89 = vector.broadcast %c2_i32_27 : i32 to vector<32x1xi32>
    %90 = arith.addi %26, %89 : vector<32x1xi32>
    %c0_i32_28 = arith.constant 0 : i32
    %91 = vector.broadcast %c0_i32_28 : i32 to vector<32x1xi32>
    %92 = arith.cmpi sge, %90, %91 : vector<32x1xi32>
    %c2_i32_29 = arith.constant 2 : i32
    %93 = vector.broadcast %c2_i32_29 : i32 to vector<32x1xi32>
    %94 = arith.addi %26, %93 : vector<32x1xi32>
    %c16_i32_30 = arith.constant 16 : i32
    %95 = vector.broadcast %c16_i32_30 : i32 to vector<32x1xi32>
    %96 = arith.cmpi slt, %94, %95 : vector<32x1xi32>
    %97 = arith.andi %92, %96 : vector<32x1xi1>
    %cst_31 = arith.constant 0.000000e+00 : f32
    %98 = vector.shape_cast %97 : vector<32x1xi1> to vector<32x1xi1>
    %99 = vector.broadcast %98 : vector<32x1xi1> to vector<32x512xi1>
    %100 = vector.broadcast %cst_31 : f32 to vector<32x512xf32>
    %101 = arith.select %99, %88, %100 : vector<32x512xi1>, vector<32x512xf32>
    %102 = vector.extract_strided_slice %27 {offsets = [4, 0], sizes = [1, 512], strides = [1, 1]} : vector<5x512xf32> to vector<1x512xf32>
    %103 = vector.broadcast %102 : vector<1x512xf32> to vector<32x512xf32>
    %104 = arith.mulf %101, %103 : vector<32x512xf32>
    %105 = arith.addf %87, %104 : vector<32x512xf32>
    %c0_32 = arith.constant 0 : index
    %c0_33 = arith.constant 0 : index
    %106 = vector.load %arg6[%c0_32, %c0_33] : memref<5x512xf32, #tpu.memory_space<vmem>>, vector<5x512xf32>
    %107 = vector.extract_strided_slice %106 {offsets = [2, 0], sizes = [1, 512], strides = [1, 1]} : vector<5x512xf32> to vector<1x512xf32>
    %108 = vector.broadcast %107 : vector<1x512xf32> to vector<32x512xf32>
    %109 = arith.mulf %105, %108 : vector<32x512xf32>
    %c0_34 = arith.constant 0 : index
    %c0_35 = arith.constant 0 : index
    %110 = vector.load %arg7[%c0_34, %c0_35] : memref<1x512xf32, #tpu.memory_space<vmem>>, vector<1x512xf32>
    %111 = vector.broadcast %110 : vector<1x512xf32> to vector<32x512xf32>
    %112 = arith.addf %109, %111 : vector<32x512xf32>
    %c64_i32 = arith.constant 64 : i32
    %113 = tpu.dynamic_rotate %105 by %c64_i32 dim 1 : vector<32x512xf32>, i32 -> vector<32x512xf32>
    %114 = vector.extract_strided_slice %106 {offsets = [0, 0], sizes = [1, 512], strides = [1, 1]} : vector<5x512xf32> to vector<1x512xf32>
    %115 = vector.broadcast %114 : vector<1x512xf32> to vector<32x512xf32>
    %116 = arith.mulf %113, %115 : vector<32x512xf32>
    %117 = arith.addf %112, %116 : vector<32x512xf32>
    %c32_i32 = arith.constant 32 : i32
    %118 = tpu.dynamic_rotate %105 by %c32_i32 dim 1 : vector<32x512xf32>, i32 -> vector<32x512xf32>
    %119 = vector.extract_strided_slice %106 {offsets = [1, 0], sizes = [1, 512], strides = [1, 1]} : vector<5x512xf32> to vector<1x512xf32>
    %120 = vector.broadcast %119 : vector<1x512xf32> to vector<32x512xf32>
    %121 = arith.mulf %118, %120 : vector<32x512xf32>
    %122 = arith.addf %117, %121 : vector<32x512xf32>
    %c480_i32 = arith.constant 480 : i32
    %123 = tpu.dynamic_rotate %105 by %c480_i32 dim 1 : vector<32x512xf32>, i32 -> vector<32x512xf32>
    %124 = vector.extract_strided_slice %106 {offsets = [3, 0], sizes = [1, 512], strides = [1, 1]} : vector<5x512xf32> to vector<1x512xf32>
    %125 = vector.broadcast %124 : vector<1x512xf32> to vector<32x512xf32>
    %126 = arith.mulf %123, %125 : vector<32x512xf32>
    %127 = arith.addf %122, %126 : vector<32x512xf32>
    %c448_i32 = arith.constant 448 : i32
    %128 = tpu.dynamic_rotate %105 by %c448_i32 dim 1 : vector<32x512xf32>, i32 -> vector<32x512xf32>
    %129 = vector.extract_strided_slice %106 {offsets = [4, 0], sizes = [1, 512], strides = [1, 1]} : vector<5x512xf32> to vector<1x512xf32>
    %130 = vector.broadcast %129 : vector<1x512xf32> to vector<32x512xf32>
    %131 = arith.mulf %128, %130 : vector<32x512xf32>
    %132 = arith.addf %127, %131 : vector<32x512xf32>
    %c0_36 = arith.constant 0 : index
    %c0_37 = arith.constant 0 : index
    %133 = vector.load %arg8[%c0_36, %c0_37] : memref<32x512xf32, #tpu.memory_space<vmem>>, vector<32x512xf32>
    tpu.vector_store %arg8[%c0_36, %c0_37], %132 {strides = array<i32>} : memref<32x512xf32, #tpu.memory_space<vmem>>, vector<32x512xf32>,
    return
  }
  func.func @transform_0(%arg0: i32) -> (i32, i32) {
    %c0_i32 = arith.constant 0 : i32
    %c0_i32_0 = arith.constant 0 : i32
    return %arg0, %c0_i32 : i32, i32
  }
  func.func @transform_1(%arg0: i32) -> (i32, i32) {
    %c0_i32 = arith.constant 0 : i32
    %c0_i32_0 = arith.constant 0 : i32
    %c0_i32_1 = arith.constant 0 : i32
    return %c0_i32, %c0_i32_0 : i32, i32
  }
  func.func @transform_2(%arg0: i32) -> (i32, i32) {
    %c0_i32 = arith.constant 0 : i32
    %c0_i32_0 = arith.constant 0 : i32
    %c0_i32_1 = arith.constant 0 : i32
    return %c0_i32, %c0_i32_0 : i32, i32
  }
  func.func @transform_3(%arg0: i32) -> (i32, i32) {
    %c0_i32 = arith.constant 0 : i32
    %c0_i32_0 = arith.constant 0 : i32
    %c0_i32_1 = arith.constant 0 : i32
    return %c0_i32, %c0_i32_0 : i32, i32
  }
  func.func @transform_4(%arg0: i32) -> (i32, i32) {
    %c0_i32 = arith.constant 0 : i32
    %c0_i32_0 = arith.constant 0 : i32
    %c0_i32_1 = arith.constant 0 : i32
    return %c0_i32, %c0_i32_0 : i32, i32
  }
  func.func @transform_5(%arg0: i32) -> (i32, i32) {
    %c0_i32 = arith.constant 0 : i32
    %c0_i32_0 = arith.constant 0 : i32
    %c0_i32_1 = arith.constant 0 : i32
    return %c0_i32, %c0_i32_0 : i32, i32
  }
  func.func @transform_6(%arg0: i32) -> (i32, i32) {
    %c0_i32 = arith.constant 0 : i32
    %c0_i32_0 = arith.constant 0 : i32
    %c0_i32_1 = arith.constant 0 : i32
    return %c0_i32, %c0_i32_0 : i32, i32
  }
  func.func @transform_7(%arg0: i32) -> (i32, i32) {
    %c0_i32 = arith.constant 0 : i32
    %c0_i32_0 = arith.constant 0 : i32
    return %arg0, %c0_i32 : i32, i32
  }
}

</mosaic_0001>

<bundles_post_ra>
// kernel: depthwise_forward_nhwc.1
= control target key start
LH: loop header
LB: loop body
LE: loop exit
PB: predicated region body
PF: predicated region fallthrough
CT: control target
= control target key end

     0   :  { %s1373_s8 = smov 96   ;;  %s3143_s1 = inlined_call_operand.vmem [shape: f32[256,256], index: 1, kind: input, shape index: {}]   ;;  %s3144_s0 = inlined_call_operand.vmem [shape: f32[32,512], index: 0, kind: input, shape index: {}]   ;;  %s3145_s2 = inlined_call_operand.vmem [shape: f32[1,512], index: 2, kind: input, shape index: {}]   ;;  %s3146_s3 = inlined_call_operand.vmem [shape: f32[5,512], index: 3, kind: input, shape index: {}]   ;;  %s3147_s4 = inlined_call_operand.vmem [shape: f32[1,512], index: 4, kind: input, shape index: {}]   ;;  %s3148_s5 = inlined_call_operand.vmem [shape: f32[5,512], index: 5, kind: input, shape index: {}]   ;;  %s3149_s6 = inlined_call_operand.vmem [shape: f32[1,512], index: 6, kind: input, shape index: {}]   ;;  %s3150_s7 = inlined_call_operand.vmem [shape: f32[32,512], index: 7, kind: output, shape index: {}]  }
   0x1   :  { %v73_v0 = vld [vmem:[%s3143_s1 + $0xf8] sm:$0xff]  ;;  %v72_v1 = vld [vmem:[%s3143_s1 + $0xf0] sm:$0xff]  ;;  %v71_v2 = vld [vmem:[%s3143_s1 + $0xe8] sm:$0xff] }
   0x2   :  { %106 = vmatprep.subr.mxu0 %v73_v0  ;;  %195 = vmatprep.subr.mxu1 %v73_v0  ;;  %v70_v3 = vld [vmem:[%s3143_s1 + $0xe0] sm:$0xff]  ;;  %v69_v4 = vld [vmem:[%s3143_s1 + $0xd8] sm:$0xff]  ;;  %v68_v5 = vld [vmem:[%s3143_s1 + $0xd0] sm:$0xff] }
   0x3   :  { %107 = vmatpush1.msra.mxu0 %v72_v1  ;;  %196 = vmatpush1.msra.mxu1 %v72_v1  ;;  %v67_v6 = vld [vmem:[%s3143_s1 + $0xc8] sm:$0xff]  ;;  %v66_v7 = vld [vmem:[%s3143_s1 + $0xc0] sm:$0xff]  ;;  %v65_v8 = vld [vmem:[%s3143_s1 + $0xb8] sm:$0xff] }
   0x4   :  { %108 = vmatprep.subr.mxu0 %v71_v2  ;;  %197 = vmatprep.subr.mxu1 %v71_v2  ;;  %v64_v9 = vld [vmem:[%s3143_s1 + $0xb0] sm:$0xff]  ;;  %v63_v10 = vld [vmem:[%s3143_s1 + $0xa8] sm:$0xff]  ;;  %v62_v11 = vld [vmem:[%s3143_s1 + $0xa0] sm:$0xff] }
   0x5   :  { %109 = vmatpush1.msra.mxu0 %v70_v3  ;;  %198 = vmatpush1.msra.mxu1 %v70_v3  ;;  %v61_v12 = vld [vmem:[%s3143_s1 + $0x98] sm:$0xff]  ;;  %v60_v13 = vld [vmem:[%s3143_s1 + $0x90] sm:$0xff]  ;;  %v59_v14 = vld [vmem:[%s3143_s1 + $0x88] sm:$0xff] }
   0x6   :  { %110 = vmatprep.subr.mxu0 %v69_v4  ;;  %199 = vmatprep.subr.mxu1 %v69_v4  ;;  %v58_v15 = vld [vmem:[%s3143_s1 + $0x80] sm:$0xff]  ;;  %v57_v16 = vld [vmem:[%s3143_s1 + $0x78] sm:$0xff]  ;;  %v56_v17 = vld [vmem:[%s3143_s1 + $0x70] sm:$0xff] }
   0x7   :  { %111 = vmatpush1.msra.mxu0 %v68_v5  ;;  %200 = vmatpush1.msra.mxu1 %v68_v5  ;;  %v55_v18 = vld [vmem:[%s3143_s1 + $0x68] sm:$0xff]  ;;  %v54_v19 = vld [vmem:[%s3143_s1 + $0x60] sm:$0xff]  ;;  %v53_v20 = vld [vmem:[%s3143_s1 + $0x58] sm:$0xff] }
   0x8   :  { %112 = vmatprep.subr.mxu0 %v67_v6  ;;  %201 = vmatprep.subr.mxu1 %v67_v6  ;;  %v52_v21 = vld [vmem:[%s3143_s1 + $0x50] sm:$0xff]  ;;  %v51_v22 = vld [vmem:[%s3143_s1 + $0x48] sm:$0xff]  ;;  %v50_v23 = vld [vmem:[%s3143_s1 + $0x40] sm:$0xff] }
   0x9   :  { %113 = vmatpush1.msra.mxu0 %v66_v7  ;;  %202 = vmatpush1.msra.mxu1 %v66_v7  ;;  %v49_v24 = vld [vmem:[%s3143_s1 + $0x38] sm:$0xff]  ;;  %v48_v25 = vld [vmem:[%s3143_s1 + $0x30] sm:$0xff]  ;;  %v47_v26 = vld [vmem:[%s3143_s1 + $0x28] sm:$0xff] }
   0xa   :  { %114 = vmatprep.subr.mxu0 %v65_v8  ;;  %203 = vmatprep.subr.mxu1 %v65_v8  ;;  %v46_v27 = vld [vmem:[%s3143_s1 + $0x20] sm:$0xff]  ;;  %v45_v28 = vld [vmem:[%s3143_s1 + $0x18] sm:$0xff]  ;;  %v44_v29 = vld [vmem:[%s3143_s1 + $0x10] sm:$0xff] }
   0xb   :  { %115 = vmatpush1.msra.mxu0 %v64_v9  ;;  %204 = vmatpush1.msra.mxu1 %v64_v9  ;;  %v43_v30 = vld [vmem:[%s3143_s1 + $0x8] sm:$0xff]  ;;  %v42_v31 = vld [vmem:[%s3143_s1] sm:$0xff]  ;;  %v105_v32 = vld [vmem:[%s3143_s1 + $0x1f8] sm:$0xff] }
   0xc   :  { %116 = vmatprep.subr.mxu0 %v63_v10  ;;  %205 = vmatprep.subr.mxu1 %v63_v10  ;;  %v104_v33 = vld [vmem:[%s3143_s1 + $0x1f0] sm:$0xff]  ;;  %v103_v34 = vld [vmem:[%s3143_s1 + $0x1e8] sm:$0xff]  ;;  %v102_v35 = vld [vmem:[%s3143_s1 + $0x1e0] sm:$0xff] }
   0xd   :  { %117 = vmatpush1.msra.mxu0 %v62_v11  ;;  %206 = vmatpush1.msra.mxu1 %v62_v11  ;;  %v101_v36 = vld [vmem:[%s3143_s1 + $0x1d8] sm:$0xff]  ;;  %v100_v37 = vld [vmem:[%s3143_s1 + $0x1d0] sm:$0xff]  ;;  %v99_v38 = vld [vmem:[%s3143_s1 + $0x1c8] sm:$0xff] }
   0xe   :  { %118 = vmatprep.subr.mxu0 %v61_v12  ;;  %207 = vmatprep.subr.mxu1 %v61_v12  ;;  %v98_v39 = vld [vmem:[%s3143_s1 + $0x1c0] sm:$0xff]  ;;  %v97_v40 = vld [vmem:[%s3143_s1 + $0x1b8] sm:$0xff]  ;;  %v96_v41 = vld [vmem:[%s3143_s1 + $0x1b0] sm:$0xff] }
   0xf   :  { %119 = vmatpush1.msra.mxu0 %v60_v13  ;;  %208 = vmatpush1.msra.mxu1 %v60_v13  ;;  %v95_v42 = vld [vmem:[%s3143_s1 + $0x1a8] sm:$0xff]  ;;  %v94_v43 = vld [vmem:[%s3143_s1 + $0x1a0] sm:$0xff]  ;;  %v93_v44 = vld [vmem:[%s3143_s1 + $0x198] sm:$0xff] }
  0x10   :  { %120 = vmatprep.subr.mxu0 %v59_v14  ;;  %209 = vmatprep.subr.mxu1 %v59_v14  ;;  %v92_v45 = vld [vmem:[%s3143_s1 + $0x190] sm:$0xff]  ;;  %v91_v46 = vld [vmem:[%s3143_s1 + $0x188] sm:$0xff]  ;;  %v90_v47 = vld [vmem:[%s3143_s1 + $0x180] sm:$0xff] }
  0x11   :  { %121 = vmatpush1.msra.mxu0 %v58_v15  ;;  %210 = vmatpush1.msra.mxu1 %v58_v15  ;;  %v89_v48 = vld [vmem:[%s3143_s1 + $0x178] sm:$0xff]  ;;  %v88_v49 = vld [vmem:[%s3143_s1 + $0x170] sm:$0xff]  ;;  %v87_v50 = vld [vmem:[%s3143_s1 + $0x168] sm:$0xff] }
  0x12   :  { %122 = vmatprep.subr.mxu0 %v57_v16  ;;  %211 = vmatprep.subr.mxu1 %v57_v16  ;;  %v86_v51 = vld [vmem:[%s3143_s1 + $0x160] sm:$0xff]  ;;  %v85_v52 = vld [vmem:[%s3143_s1 + $0x158] sm:$0xff]  ;;  %v84_v53 = vld [vmem:[%s3143_s1 + $0x150] sm:$0xff]  ;;  %v3151_v16 = vlaneseq }
  0x13   :  { %123 = vmatpush1.msra.mxu0 %v56_v17  ;;  %212 = vmatpush1.msra.mxu1 %v56_v17  ;;  %v83_v54 = vld [vmem:[%s3143_s1 + $0x148] sm:$0xff]  ;;  %v82_v55 = vld [vmem:[%s3143_s1 + $0x140] sm:$0xff]  ;;  %v81_v56 = vld [vmem:[%s3143_s1 + $0x138] sm:$0xff] }
  0x14   :  { %124 = vmatprep.subr.mxu0 %v55_v18  ;;  %213 = vmatprep.subr.mxu1 %v55_v18  ;;  %v80_v57 = vld [vmem:[%s3143_s1 + $0x130] sm:$0xff]  ;;  %v79_v58 = vld [vmem:[%s3143_s1 + $0x128] sm:$0xff]  ;;  %v78_v59 = vld [vmem:[%s3143_s1 + $0x120] sm:$0xff]  ;;  %v1655_v17 = vshrl.u32 %v3151_v16, 7 }
  0x15   :  { %125 = vmatpush1.msra.mxu0 %v54_v19  ;;  %214 = vmatpush1.msra.mxu1 %v54_v19  ;;  %v77_v60 = vld [vmem:[%s3143_s1 + $0x118] sm:$0xff]  ;;  %v76_v61 = vld [vmem:[%s3143_s1 + $0x110] sm:$0xff]  ;;  %v75_v62 = vld [vmem:[%s3143_s1 + $0x108] sm:$0xff] }
  0x16   :  { %126 = vmatprep.subr.mxu0 %v53_v20  ;;  %215 = vmatprep.subr.mxu1 %v53_v20  ;;  %v74_v63 = vld [vmem:[%s3143_s1 + $0x100] sm:$0xff]  ;;  %v27_v0 = vld [vmem:[%s3144_s0 + $0x8] sm:$0xff]  ;;  %v29_v1 = vld [vmem:[%s3144_s0 + $0x18] sm:$0xff]  ;;  %v1658_v18 = vsub.s32 0, %v1655_v17  ;;  %v1664_v20 = vsub.s32 2, %v1655_v17  ;;  %vm465_vm0 = vcmp.lt.s32.totalorder %v1655_v17, 2 }
  0x17   :  { %127 = vmatpush1.msra.mxu0 %v52_v21  ;;  %216 = vmatpush1.msra.mxu1 %v52_v21  ;;  %v26_v2 = vld [vmem:[%s3144_s0] sm:$0xff]  ;;  %v28_v3 = vld [vmem:[%s3144_s0 + $0x10] sm:$0xff]  ;;  %v31_v4 = vld [vmem:[%s3144_s0 + $0x28] sm:$0xff]  ;;  %vm586_vm1 = vcmp.lt.s32.totalorder %v1655_v17, 1  ;;  %vm707_vm3 = vcmp.lt.s32.totalorder %v1655_v17, 7  ;;  %vm828_vm4 = vcmp.lt.s32.totalorder %v1655_v17, 6 }
  0x18   :  { %128 = vmatprep.subr.mxu0 %v51_v22  ;;  %217 = vmatprep.subr.mxu1 %v51_v22  ;;  %v33_v5 = vld [vmem:[%s3144_s0 + $0x38] sm:$0xff]  ;;  %v30_v6 = vld [vmem:[%s3144_s0 + $0x20] sm:$0xff]  ;;  %v32_v7 = vld [vmem:[%s3144_s0 + $0x30] sm:$0xff]  ;;  %3189 = vst [vmem:[#allocation2_spill] sm:$0xff] %v1658_v18 }
  0x19   :  { %129 = vmatpush1.msra.mxu0 %v50_v23  ;;  %218 = vmatpush1.msra.mxu1 %v50_v23  ;;  %v35_v8 = vld [vmem:[%s3144_s0 + $0x48] sm:$0xff]  ;;  %v37_v9 = vld [vmem:[%s3144_s0 + $0x58] sm:$0xff]  ;;  %v34_v10 = vld [vmem:[%s3144_s0 + $0x40] sm:$0xff]  ;;  %3190 = vst [vmem:[#allocation3_spill] sm:$0xff] %v1664_v20  ;;  %v1673_v23 = vsub.s32 1, %v1655_v17 }
  0x1a   :  { %130 = vmatprep.subr.mxu0 %v49_v24  ;;  %219 = vmatprep.subr.mxu1 %v49_v24  ;;  %v36_v11 = vld [vmem:[%s3144_s0 + $0x50] sm:$0xff]  ;;  %v39_v12 = vld [vmem:[%s3144_s0 + $0x68] sm:$0xff]  ;;  %v41_v13 = vld [vmem:[%s3144_s0 + $0x78] sm:$0xff]  ;;  %v324_v24 = vadd.s32 8, %v1655_v17 }
  0x1b   :  { %131 = vmatpush1.msra.mxu0 %v48_v25  ;;  %220 = vmatpush1.msra.mxu1 %v48_v25  ;;  %v38_v14 = vld [vmem:[%s3144_s0 + $0x60] sm:$0xff]  ;;  %v40_v15 = vld [vmem:[%s3144_s0 + $0x70] sm:$0xff]  ;;  %3191 = vst [vmem:[#allocation4_spill] sm:$0xff] %v1673_v23 }
  0x1c   :  { %132 = vmatprep.subr.mxu0 %v47_v26  ;;  %221 = vmatprep.subr.mxu1 %v47_v26  ;;  %v284_v19 = vld [vmem:[%s3145_s2] sm:$0xf]  ;;  %v377_v22 = vld [vmem:[%s3146_s3 + $0x10] sm:$0x1f]  ;;  %v1680_v26 = vsub.s32 3, %v1655_v17 }
  0x1d   :  { %133 = vmatpush1.msra.mxu0 %v46_v27  ;;  %222 = vmatpush1.msra.mxu1 %v46_v27  ;;  %v375_v21 = vld [vmem:[%s3146_s3] sm:$0x1f]  ;;  %v1683_v27 = vrot.slane %v284_v19, %v1658_v18 }
  0x1e   :  { %134 = vmatprep.subr.mxu0 %v45_v28  ;;  %223 = vmatprep.subr.mxu1 %v45_v28  ;;  %v411_v25 = vld [vmem:[%s3147_s4] sm:$0xf]  ;;  %3192 = vst [vmem:[#allocation5_spill] sm:$0xff] %v1680_v26  ;;  %v376_v28 = vld [vmem:[%s3146_s3 + $0x8] sm:$0x1f]  ;;  %s1372_s4 = smov 32  }
  0x1f   :  { %135 = vmatpush1.msra.mxu0 %v44_v29  ;;  %224 = vmatpush1.msra.mxu1 %v44_v29  ;;  %v378_v29 = vld [vmem:[%s3146_s3 + $0x18] sm:$0x1f]  ;;  %s1371_s3 = smov 64  }
  0x20   :  { %136 = vmatprep.subr.mxu0 %v43_v30  ;;  %225 = vmatprep.subr.mxu1 %v43_v30  ;;  %v325_v30 = vadd.s32 16, %v1655_v17 }
  0x21   :  { %137 = vmatpush1.msra.mxu0 %v42_v31  ;;  %226 = vmatpush1.msra.mxu1 %v42_v31  ;;  %v1693_v31 = vrot.slane %v375_v21, %v1664_v20 }
  0x22   :  { %138 = vmatprep.subr.mxu0 %v105_v32  ;;  %227 = vmatprep.subr.mxu1 %v105_v32  ;;  %v1696_v32 = vrot.slane %v284_v19, %v1664_v20 }
  0x23   :  { %139 = vmatpush2.msra.mxu0 %v104_v33  ;;  %228 = vmatpush2.msra.mxu1 %v104_v33  ;;  %v1699_v33 = vrot.slane %v377_v22, %v1664_v20 }
  0x24   :  { %140 = vmatprep.subr.mxu0 %v103_v34  ;;  %229 = vmatprep.subr.mxu1 %v103_v34  ;;  %v1702_v34 = vsub.s32 4, %v1655_v17 }
  0x25   :  { %141 = vmatpush2.msra.mxu0 %v102_v35  ;;  %230 = vmatpush2.msra.mxu1 %v102_v35  ;;  %v1705_v35 = vrot.slane %v411_v25, %v1658_v18 }
  0x26   :  { %142 = vmatprep.subr.mxu0 %v101_v36  ;;  %231 = vmatprep.subr.mxu1 %v101_v36  ;;  %3193 = vst [vmem:[#allocation6_spill] sm:$0xff] %v1702_v34  ;;  %v1708_v36 = vrot.slane %v411_v25, %v1664_v20 }
  0x27   :  { %143 = vmatpush2.msra.mxu0 %v100_v37  ;;  %232 = vmatpush2.msra.mxu1 %v100_v37  ;;  %v1711_v37 = vrot.slane %v284_v19, %v1673_v23 }
  0x28   :  { %144 = vmatprep.subr.mxu0 %v99_v38  ;;  %233 = vmatprep.subr.mxu1 %v99_v38  ;;  %v338_v38 = vand.u32 15, %v324_v24 }
  0x29   :  { %145 = vmatpush2.msra.mxu0 %v98_v39  ;;  %234 = vmatpush2.msra.mxu1 %v98_v39  ;;  %v1714_v39 = vrot.slane %v376_v28, %v1664_v20 }
  0x2a   :  { %146 = vmatprep.subr.mxu0 %v97_v40  ;;  %235 = vmatprep.subr.mxu1 %v97_v40  ;;  %v1717_v40 = vrot.slane %v284_v19, %v1680_v26 }
  0x2b   :  { %147 = vmatpush2.msra.mxu0 %v96_v41  ;;  %236 = vmatpush2.msra.mxu1 %v96_v41  ;;  %v1720_v41 = vrot.slane %v378_v29, %v1664_v20 }
  0x2c   :  { %148 = vmatprep.subr.mxu0 %v95_v42  ;;  %237 = vmatprep.subr.mxu1 %v95_v42  ;;  %v326_v42 = vadd.s32 24, %v1655_v17 }
  0x2d   :  { %149 = vmatpush2.msra.mxu0 %v94_v43  ;;  %238 = vmatpush2.msra.mxu1 %v94_v43  ;;  %v1724_v43 = vrot.slane %v411_v25, %v1673_v23 }
  0x2e   :  { %150 = vmatprep.subr.mxu0 %v93_v44  ;;  %239 = vmatprep.subr.mxu1 %v93_v44  ;;  %v1727_v44 = vrot.slane %v411_v25, %v1680_v26 }
  0x2f   :  { %151 = vmatpush2.msra.mxu0 %v92_v45  ;;  %240 = vmatpush2.msra.mxu1 %v92_v45  ;;  %3194 = vst [vmem:[#allocation7_spill] sm:$0xff] %v1724_v43  ;;  %v1730_v45 = vrot.slane %v377_v22, %v1658_v18 }
  0x30   :  { %152 = vmatprep.subr.mxu0 %v91_v46  ;;  %241 = vmatprep.subr.mxu1 %v91_v46  ;;  %3195 = vst [vmem:[#allocation8_spill] sm:$0xff] %v1727_v44  ;;  %v345_v46 = vand.u32 15, %v325_v30 }
  0x31   :  { %153 = vmatpush2.msra.mxu0 %v90_v47  ;;  %242 = vmatpush2.msra.mxu1 %v90_v47  ;;  %v1733_v47 = vrot.slane %v377_v22, %v1673_v23 }
  0x32   :  { %154 = vmatprep.subr.mxu0 %v89_v48  ;;  %243 = vmatprep.subr.mxu1 %v89_v48  ;;  %v1736_v48 = vrot.slane %v377_v22, %v1680_v26 }
  0x33   :  { %155 = vmatpush2.msra.mxu0 %v88_v49  ;;  %244 = vmatpush2.msra.mxu1 %v88_v49  ;;  %v1739_v49 = vrot.slane %v377_v22, %v1702_v34 }
  0x34   :  { %156 = vmatprep.subr.mxu0 %v87_v50  ;;  %245 = vmatprep.subr.mxu1 %v87_v50  ;;  %v1742_v50 = vrot.slane %v375_v21, %v1658_v18 }
  0x35   :  { %157 = vmatpush2.msra.mxu0 %v86_v51  ;;  %246 = vmatpush2.msra.mxu1 %v86_v51  ;;  %3196 = vst [vmem:[#allocation9_spill] sm:$0xff] %v1739_v49 }
  0x36   :  { %158 = vmatprep.subr.mxu0 %v85_v52  ;;  %247 = vmatprep.subr.mxu1 %v85_v52 }
  0x37   :  { %159 = vmatpush2.msra.mxu0 %v84_v53  ;;  %248 = vmatpush2.msra.mxu1 %v84_v53  ;;  %v1744_v53 = vadd.s32 1, %v338_v38 }
  0x38   :  { %160 = vmatprep.subr.mxu0 %v83_v54  ;;  %249 = vmatprep.subr.mxu1 %v83_v54  ;;  %v1746_v54 = vadd.s32 2, %v338_v38 }
  0x39   :  { %161 = vmatpush2.msra.mxu0 %v82_v55  ;;  %250 = vmatpush2.msra.mxu1 %v82_v55  ;;  %v1749_v55 = vrot.slane %v375_v21, %v1673_v23  ;;  %vm733_vm2 = vcmp.lt.s32.totalorder %v1744_v53, 16 }
  0x3a   :  { %162 = vmatprep.subr.mxu0 %v81_v56  ;;  %251 = vmatprep.subr.mxu1 %v81_v56  ;;  %v1752_v56 = vrot.slane %v375_v21, %v1680_v26  ;;  %vm854_vm5 = vcmp.lt.s32.totalorder %v1746_v54, 16 }
  0x3b   :  { %163 = vmatpush2.msra.mxu0 %v80_v57  ;;  %252 = vmatpush2.msra.mxu1 %v80_v57 }
  0x3c   :  { %164 = vmatprep.subr.mxu0 %v79_v58  ;;  %253 = vmatprep.subr.mxu1 %v79_v58  ;;  %v1758_v58 = vrot.slane %v375_v21, %v1702_v34 }
  0x3d   :  { %165 = vmatpush2.msra.mxu0 %v78_v59  ;;  %254 = vmatpush2.msra.mxu1 %v78_v59  ;;  %v331_v59 = vand.u32 15, %v1655_v17 }
  0x3e   :  { %166 = vmatprep.subr.mxu0 %v77_v60  ;;  %255 = vmatprep.subr.mxu1 %v77_v60  ;;  %v352_v60 = vand.u32 15, %v326_v42 }
  0x3f   :  { %167 = vmatpush2.msra.mxu0 %v76_v61  ;;  %256 = vmatpush2.msra.mxu1 %v76_v61 }
  0x40   :  { %168 = vmatprep.subr.mxu0 %v75_v62  ;;  %257 = vmatprep.subr.mxu1 %v75_v62  ;;  %v1801_v19 = vadd.s32 1, %v352_v60 }
  0x41   :  { %169 = vmatpush2.msra.mxu0 %v74_v63  ;;  %170 = vmatprep.mubr.f32.mxu0 %v27_v0  ;;  %v1764_v0 = vadd.s32 4294967294, %v345_v46 }
  0x42   :  { %258 = vmatpush2.msra.mxu1 %v74_v63  ;;  %259 = vmatprep.mubr.f32.mxu1 %v29_v1  ;;  %v1766_v1 = vadd.s32 4294967295, %v345_v46  ;;  %3198 = vst [vmem:[#allocation11_spill] sm:$0xff] %v1801_v19 }
  0x43   :  { %171 = vmatmul.mubr.f32.vlgmr.msra.gmra.mxu0 %v26_v2  ;;  %260 = vmatmul.mubr.f32.vlgmr.msra.gmra.mxu1 %v28_v3  ;;  %v1769_v2 = vrot.slane %v376_v28, %v1658_v18  ;;  %v1772_v3 = vrot.slane %v376_v28, %v1673_v23  ;;  %vm488_vm6 = vcmp.ge.s32.totalorder %v1764_v0, 0 }
  0x44   :  { %176 = vmatprep.mubr.f32.mxu0 %v31_v4  ;;  %265 = vmatprep.mubr.f32.mxu1 %v33_v5  ;;  %v1775_v4 = vrot.slane %v376_v28, %v1680_v26  ;;  %v1778_v5 = vrot.slane %v376_v28, %v1702_v34  ;;  %v1811_v28 = vadd.s32 2, %v352_v60  ;;  %vm609_vm7 = vcmp.ge.s32.totalorder %v1766_v1, 0 }
  0x46   :  { %3200 = vst [vmem:[#allocation13_spill] sm:$0xff] %v1811_v28 }
  0x47   :  { %177 = vmatmul.mubr.f32.gmra.mxu0 %v30_v6  ;;  %266 = vmatmul.mubr.f32.gmra.mxu1 %v32_v7  ;;  %v1781_v6 = vrot.slane %v378_v29, %v1658_v18 }
  0x48   :  { %182 = vmatprep.mubr.f32.mxu0 %v35_v8  ;;  %271 = vmatprep.mubr.f32.mxu1 %v37_v9 }
  0x4b   :  { %183 = vmatmul.mubr.f32.gmra.mxu0 %v34_v10  ;;  %272 = vmatmul.mubr.f32.gmra.mxu1 %v36_v11  ;;  %v1786_v10 = vrot.slane %v378_v29, %v1673_v23  ;;  %v1789_v11 = vrot.slane %v378_v29, %v1680_v26 }
  0x4c   :  { %188 = vmatprep.mubr.f32.mxu0 %v39_v12  ;;  %277 = vmatprep.mubr.f32.mxu1 %v41_v13  ;;  %v1792_v12 = vrot.slane %v378_v29, %v1702_v34 }
  0x4e   :  { %3197 = vst [vmem:[#allocation10_spill] sm:$0xff] %v1792_v12 }
  0x4f   :  { %189 = vmatmul.mubr.f32.gmra.mxu0 %v38_v14  ;;  %278 = vmatmul.mubr.f32.gmra.mxu1 %v40_v15  ;;  %v1797_v14 = vadd.s32 4294967294, %v331_v59  ;;  %v1799_v15 = vadd.s32 4294967295, %v331_v59 }
  0x51   :  { %vm486_vm8 = vcmp.ge.s32.totalorder %v1797_v14, 0  ;;  %vm607_vm9 = vcmp.ge.s32.totalorder %v1799_v15, 0 }
 0x103   :  { %v172_v51 = vpop.f32.mrf.mxu0  ;;  %v261_v52 = vpop.f32.mrf.mxu1 }
 0x104   :  { %v1755_v57 = vadd.f32 %v1683_v27, %v172_v51  ;;  %v1762_v61 = vadd.f32 %v1696_v32, %v261_v52 }
 0x105   :  { %v174_v62 = vpop.f32.mrf.mxu0  ;;  %v263_v63 = vpop.f32.mrf.mxu1 }
 0x106   :  { %v395_v7 = vmul.f32 %v1693_v31, %v1755_v57  ;;  %v1795_v13 = vadd.f32 %v1711_v37, %v174_v62  ;;  %v397_v21 = vmul.f32 %v1699_v33, %v1762_v61  ;;  %v1806_v22 = vadd.f32 %v1717_v40, %v263_v63 }
 0x107   :  { %v178_v8 = vpop.f32.mrf.mxu0  ;;  %v267_v9 = vpop.f32.mrf.mxu1 }
 0x108   :  { %3199 = vst [vmem:[#allocation12_spill] sm:$0xff] %v1806_v22  ;;  %v1809_v24 = vadd.f32 %v1683_v27, %v178_v8  ;;  %v1818_v51 = vadd.f32 %v1705_v35, %v395_v7  ;;  %v396_v60 = vmul.f32 %v1714_v39, %v1795_v13  ;;  %v398_v8 = vmul.f32 %v1720_v41, %v1806_v22 }
 0x109   :  { %v180_v25 = vpop.f32.mrf.mxu0  ;;  %v269_v46 = vpop.f32.mrf.mxu1  ;;  %v1829_v16 = vadd.f32 %v1696_v32, %v267_v9  ;;  %v1832_v7 = vadd.f32 %v1708_v36, %v397_v21 }
 0x10a   :  { %3201 = vst [vmem:[#allocation14_spill] sm:$0xff] %v1818_v51  ;;  %v399_v29 = vmul.f32 %v1693_v31, %v1809_v24  ;;  %v1843_v34 = vadd.f32 %v1724_v43, %v396_v60  ;;  %v1848_v30 = vadd.f32 %v1711_v37, %v180_v25  ;;  %v1851_v26 = vadd.f32 %v1727_v44, %v398_v8 }
 0x10b   :  { %v184_v42 = vpop.f32.mrf.mxu0  ;;  %3202 = vst [vmem:[#allocation15_spill] sm:$0xff] %v1832_v7  ;;  %v273_v52 = vpop.f32.mrf.mxu1  ;;  %v401_v63 = vmul.f32 %v1699_v33, %v1829_v16  ;;  %v1856_v62 = vadd.f32 %v1717_v40, %v269_v46  ;;  %v3205_v12 = vrot.slane %v1829_v16, 6 }
 0x10c   :  { %3203 = vst [vmem:[#allocation16_spill] sm:$0xff] %v1843_v34  ;;  %3204 = vst [vmem:[#allocation17_spill] sm:$0xff] %v1851_v26  ;;  %v1859_v9 = vadd.f32 %v1683_v27, %v184_v42  ;;  %v1862_v21 = vadd.f32 %v1705_v35, %v399_v29  ;;  %v400_v42 = vmul.f32 %v1714_v39, %v1848_v30  ;;  %v3259_v53 = vrot.slane %v1848_v30, 7 }
 0x10d   :  { %v186_v60 = vpop.f32.mrf.mxu0  ;;  %v275_v23 = vpop.f32.mrf.mxu1  ;;  %v402_v38 = vmul.f32 %v1720_v41, %v1856_v62  ;;  %v1877_v25 = vadd.f32 %v1696_v32, %v273_v52  ;;  %v1881_v59 = vadd.f32 %v1708_v36, %v401_v63 }
 0x10e   :  { %v403_v20 = vmul.f32 %v1693_v31, %v1859_v9  ;;  %v1893_v63 = vadd.f32 %v1724_v43, %v400_v42  ;;  %v1898_v7 = vadd.f32 %v1711_v37, %v186_v60  ;;  %v1906_v34 = vadd.f32 %v1717_v40, %v275_v23 }
 0x10f   :  { %v190_v18 = vpop.f32.mrf.mxu0  ;;  %v279_v51 = vpop.f32.mrf.mxu1  ;;  %v1901_v29 = vadd.f32 %v1727_v44, %v402_v38  ;;  %v405_v26 = vmul.f32 %v1699_v33, %v1877_v25 }
 0x110   :  { %v1909_v42 = vadd.f32 %v1683_v27, %v190_v18  ;;  %v1912_v8 = vadd.f32 %v1705_v35, %v403_v20  ;;  %v404_v23 = vmul.f32 %v1714_v39, %v1898_v7  ;;  %v1923_v18 = vadd.f32 %v1696_v32, %v279_v51 }
 0x111   :  { %v406_v46 = vmul.f32 %v1720_v41, %v1906_v34  ;;  %v1934_v28 = vadd.f32 %v1708_v36, %v405_v26  ;;  %v192_v52 = vpop.f32.mrf.mxu0  ;;  %v281_v19 = vpop.f32.mrf.mxu1  ;;  %v3212_v27 = vrot.slane %v1877_v25, 1 }
 0x112   :  { %v407_v38 = vmul.f32 %v1693_v31, %v1909_v42  ;;  %v1946_v26 = vadd.f32 %v1724_v43, %v404_v23  ;;  %v409_v31 = vmul.f32 %v1699_v33, %v1923_v18  ;;  %v1957_v60 = vadd.f32 %v1711_v37, %v192_v52 }
 0x113   :  { %v1953_v20 = vadd.f32 %v1727_v44, %v406_v46  ;;  %v3206_v23 = vrot.slane %v1762_v61, 6  ;;  %v3208_v43 = vrot.slane %v1829_v16, 7  ;;  %v1986_v46 = vadd.f32 %v1717_v40, %v281_v19 }
 0x114   :  { %v1967_v33 = vadd.f32 %v1705_v35, %v407_v38  ;;  %v1982_v38 = vadd.f32 %v1708_v36, %v409_v31  ;;  %v1991_v51 = vmul.f32 %v1714_v39, %v1957_v60  ;;  %v3214_v31 = vrot.slane %v1877_v25, 2 }
 0x115   :  { %v476_v32 = vsel %vm465_vm0, %v3206_v23, %v3205_v12  ;;  %v3209_v12 = vrot.slane %v1762_v61, 7  ;;  %v3215_v40 = vrot.slane %v1829_v16, 2  ;;  %v3216_v37 = vrot.slane %v1809_v24, 6 }
 0x116   :  { %3207 = vst [vmem:[#allocation18_spill] sm:$0xff] %v1967_v33  ;;  %3210 = vst [vmem:[#allocation19_spill] sm:$0xff] %v1982_v38  ;;  %v544_v52 = vmul.f32 %v1730_v45, %v476_v32  ;;  %v3217_v23 = vrot.slane %v1755_v57, 6  ;;  %v3220_v38 = vrot.slane %v1859_v9, 1  ;;  %v3333_v15 = vrot.slane %v1957_v60, 7 }
 0x117   :  { %v597_v35 = vsel %vm586_vm1, %v3209_v12, %v3208_v43  ;;  %3211 = vst [vmem:[#allocation20_spill] sm:$0xff] %v1991_v51  ;;  %v3213_v43 = vrot.slane %v1829_v16, 1  ;;  %v835_v19 = vsel %vm828_vm4, %v3215_v40, %v3214_v31 }
 0x118   :  { %v560_v32 = vadd.f32 %v544_v52, %v1881_v59  ;;  %v665_v39 = vmul.f32 %v1733_v47, %v597_v35  ;;  %v875_v44 = vsel %vm854_vm5, %v835_v19, 0.0  ;;  %v3218_v59 = vrot.slane %v1809_v24, 7 }
 0x119   :  { %v714_v36 = vsel %vm707_vm3, %v3213_v43, %v3212_v27  ;;  %v474_v27 = vsel %vm465_vm0, %v3217_v23, %v3216_v37  ;;  %v3219_v52 = vrot.slane %v1755_v57, 7  ;;  %v3221_v37 = vrot.slane %v1809_v24, 1 }
 0x11a   :  { %v754_v12 = vsel %vm733_vm2, %v714_v36, 0.0  ;;  %v542_v31 = vmul.f32 %v1742_v50, %v474_v27  ;;  %v681_v36 = vadd.f32 %v665_v39, %v560_v32  ;;  %v3222_v19 = vrot.slane %v1859_v9, 2 }
 0x11b   :  { %v786_v43 = vmul.f32 %v1736_v48, %v754_v12  ;;  %v595_v35 = vsel %vm586_vm1, %v3219_v52, %v3218_v59  ;;  %v712_v23 = vsel %vm707_vm3, %v3221_v37, %v3220_v38  ;;  %v3223_v12 = vrot.slane %v1809_v24, 2 }
 0x11c   :  { %v663_v40 = vmul.f32 %v1749_v55, %v595_v35  ;;  %v558_v51 = vadd.f32 %v542_v31, %v1862_v21  ;;  %v752_v32 = vsel %vm733_vm2, %v712_v23, 0.0  ;;  %v3224_v59 = vrot.slane %v1877_v25, 6 }
 0x11d   :  { %v833_v27 = vsel %vm828_vm4, %v3223_v12, %v3222_v19  ;;  %v3225_v52 = vrot.slane %v1829_v16, 6  ;;  %v802_v35 = vadd.f32 %v786_v43, %v681_v36  ;;  %v907_v37 = vmul.f32 %v1739_v49, %v875_v44 }
 0x11e   :  { %v873_v39 = vsel %vm854_vm5, %v833_v27, 0.0  ;;  %v784_v19 = vmul.f32 %v1752_v56, %v752_v32  ;;  %v679_v31 = vadd.f32 %v663_v40, %v558_v51  ;;  %v3226_v12 = vrot.slane %v1877_v25, 7 }
 0x11f   :  { %v472_v38 = vsel %vm465_vm0, %v3225_v52, %v3224_v59  ;;  %v3227_v27 = vrot.slane %v1829_v16, 7  ;;  %v3228_v59 = vrot.slane %v1923_v18, 1  ;;  %v3229_v43 = vrot.slane %v1877_v25, 1 }
 0x120   :  { %v516_v21 = vsel %vm488_vm6, %v472_v38, 0.0  ;;  %v2067_v36 = vadd.f32 %v907_v37, %v802_v35  ;;  %v905_v51 = vmul.f32 %v1758_v58, %v873_v39  ;;  %v800_v52 = vadd.f32 %v784_v19, %v679_v31 }
 0x121   :  { %v548_v23 = vmul.f32 %v1730_v45, %v516_v21  ;;  %v593_v33 = vsel %vm586_vm1, %v3227_v27, %v3226_v12  ;;  %v710_v44 = vsel %vm707_vm3, %v3229_v43, %v3228_v59  ;;  %v3230_v12 = vrot.slane %v1923_v18, 2 }
 0x122   :  { %v637_v40 = vsel %vm609_vm7, %v593_v33, 0.0  ;;  %v790_v32 = vmul.f32 %v1736_v48, %v710_v44  ;;  %v3231_v27 = vrot.slane %v1877_v25, 2  ;;  %1025 = vrot.lane.b32.xlu1 %v2067_v36, %s1371_s3  ;;  %v3232_v33 = vrot.slane %v1859_v9, 6 }
 0x123   :  { %v564_v38 = vadd.f32 %v548_v23, %v1934_v28  ;;  %v669_v21 = vmul.f32 %v1733_v47, %v637_v40  ;;  %v3233_v39 = vrot.slane %v1809_v24, 6  ;;  %v3234_v19 = vrot.slane %v1859_v9, 7 }
 0x124   :  { %v831_v35 = vsel %vm828_vm4, %v3231_v27, %v3230_v12  ;;  %v3235_v31 = vrot.slane %v1809_v24, 7  ;;  %v3236_v59 = vrot.slane %v1909_v42, 1  ;;  %v3237_v43 = vrot.slane %v1859_v9, 1 }
 0x125   :  { %v470_v28 = vsel %vm465_vm0, %v3233_v39, %v3232_v33  ;;  %v2102_v40 = vadd.f32 %v905_v51, %v800_v52  ;;  %v685_v12 = vadd.f32 %v669_v21, %v564_v38  ;;  %v3238_v52 = vrot.slane %v1848_v30, 6 }
 0x126   :  { %v591_v23 = vsel %vm586_vm1, %v3235_v31, %v3234_v19  ;;  %v708_v44 = vsel %vm707_vm3, %v3237_v43, %v3236_v59  ;;  %v514_v27 = vsel %vm488_vm6, %v470_v28, 0.0  ;;  %v911_v19 = vmul.f32 %v1739_v49, %v831_v35 }
 0x127   :  { %v635_v33 = vsel %vm609_vm7, %v591_v23, 0.0  ;;  %v546_v31 = vmul.f32 %v1742_v50, %v514_v27  ;;  %1009 = vrot.lane.b32.xlu0 %v2102_v40, %s1371_s3  ;;  %v806_v51 = vadd.f32 %v790_v32, %v685_v12  ;;  %v3239_v38 = vrot.slane %v1795_v13, 6  ;;  %1108 = vrot.lane.b32.xlu1 %v2102_v40, %s1372_s4 }
 0x128   :  { %v667_v37 = vmul.f32 %v1749_v55, %v635_v33  ;;  %v3240_v28 = vrot.slane %v1848_v30, 7  ;;  %v3241_v23 = vrot.slane %v1795_v13, 7  ;;  %v3242_v59 = vrot.slane %v1898_v7, 1 }
 0x129   :  { %v475_v21 = vsel %vm465_vm0, %v3239_v38, %v3238_v52  ;;  %v3243_v43 = vrot.slane %v1848_v30, 1  ;;  %v562_v12 = vadd.f32 %v546_v31, %v1912_v8  ;;  %v788_v27 = vmul.f32 %v1752_v56, %v708_v44 }
 0x12a   :  { %v596_v35 = vsel %vm586_vm1, %v3241_v23, %v3240_v28  ;;  %v543_v33 = vmul.f32 %v1769_v2, %v475_v21  ;;  %v2139_v38 = vadd.f32 %v911_v19, %v806_v51  ;;  %v3244_v28 = vrot.slane %v1909_v42, 2 }
 0x12b   :  { %v713_v32 = vsel %vm707_vm3, %v3243_v43, %v3242_v59  ;;  %v3245_v23 = vrot.slane %v1859_v9, 2  ;;  %v664_v43 = vmul.f32 %v1772_v3, %v596_v35  ;;  %v3246_v8 = vrot.slane %v1856_v62, 6  ;;  %1124 = vrot.lane.b32.xlu1 %v2067_v36, %s1372_s4 }
 0x12c   :  { %v753_v52 = vsel %vm733_vm2, %v713_v32, 0.0  ;;  %v3247_v44 = vrot.slane %v1806_v22, 6  ;;  %v683_v21 = vadd.f32 %v667_v37, %v562_v12  ;;  %v559_v19 = vadd.f32 %v543_v33, %v1893_v63  ;;  %1027 = vrot.lane.b32.xlu0 %v2139_v38, %s1371_s3 }
 0x12d   :  { %v829_v59 = vsel %vm828_vm4, %v3245_v23, %v3244_v28  ;;  %v785_v51 = vmul.f32 %v1775_v4, %v753_v52  ;;  %v3248_v28 = vrot.slane %v1898_v7, 2  ;;  %v3249_v35 = vrot.slane %v1848_v30, 2 }
 0x12e   :  { %v477_v31 = vsel %vm465_vm0, %v3247_v44, %v3246_v8  ;;  %v3250_v39 = vrot.slane %v1856_v62, 7  ;;  %v3251_v37 = vrot.slane %v1806_v22, 7  ;;  %v3252_v12 = vrot.slane %v1906_v34, 1 }
 0x12f   :  { %v545_v32 = vmul.f32 %v1781_v6, %v477_v31  ;;  %v834_v23 = vsel %vm828_vm4, %v3249_v35, %v3248_v28  ;;  %v3253_v33 = vrot.slane %v1856_v62, 1  ;;  %v3254_v8 = vrot.slane %v1906_v34, 2  ;;  %1205 = vrot.lane.b32.xlu1 %v2102_v40, %s1373_s8 }
 0x130   :  { %v598_v63 = vsel %vm586_vm1, %v3251_v37, %v3250_v39  ;;  %v3255_v44 = vrot.slane %v1856_v62, 2  ;;  %v804_v39 = vadd.f32 %v788_v27, %v683_v21  ;;  %v909_v28 = vmul.f32 %v1758_v58, %v829_v59 }
 0x131   :  { %v715_v52 = vsel %vm707_vm3, %v3253_v33, %v3252_v12  ;;  %v680_v35 = vadd.f32 %v664_v43, %v559_v19  ;;  %v561_v37 = vadd.f32 %v545_v32, %v1901_v29  ;;  %v3172_v12 = vrot.slane %v1957_v60, 2 }
 0x132   :  { %v836_v31 = vsel %vm828_vm4, %v3255_v44, %v3254_v8  ;;  %v666_v33 = vmul.f32 %v1786_v10, %v598_v63  ;;  %v755_v8 = vsel %vm733_vm2, %v715_v52, 0.0  ;;  %v3256_v44 = vrot.slane %v1898_v7, 6 }
 0x133   :  { %v3257_v49 = vrot.slane %v1848_v30, 6  ;;  %v2199_v27 = vadd.f32 %v909_v28, %v804_v39  ;;  %v874_v59 = vsel %vm854_vm5, %v834_v23, 0.0  ;;  %v876_v29 = vsel %vm854_vm5, %v836_v31, 0.0  ;;  %1221 = vrot.lane.b32.xlu1 %v2067_v36, %s1373_s8 }
 0x134   :  { %v3258_v43 = vrot.slane %v1898_v7, 7  ;;  %v801_v19 = vadd.f32 %v785_v51, %v680_v35  ;;  %v682_v32 = vadd.f32 %v666_v33, %v561_v37  ;;  %v787_v63 = vmul.f32 %v1789_v11, %v755_v8  ;;  %v3262_v37 = vld [vmem:[#allocation10_spill] sm:$0xff] }
 0x135   :  { %v471_v22 = vsel %vm465_vm0, %v3257_v49, %v3256_v44  ;;  %v2216_v23 = vmul.f32 %v1720_v41, %v1986_v46  ;;  %v3171_v52 = vrot.slane %v1986_v46, 1  ;;  %1110 = vrot.lane.b32.xlu0 %v2199_v27, %s1372_s4  ;;  %v827_v31 = vrot.slane %v1986_v46, 2 }
 0x136   :  { %v592_v21 = vsel %vm586_vm1, %v3259_v53, %v3258_v43  ;;  %v515_v49 = vsel %vm488_vm6, %v471_v22, 0.0  ;;  %v906_v22 = vmul.f32 %v1778_v5, %v874_v59  ;;  %v3260_v39 = vrot.slane %v1906_v34, 6 }
 0x137   :  { %v547_v51 = vmul.f32 %v1769_v2, %v515_v49  ;;  %v636_v41 = vsel %vm609_vm7, %v592_v21, 0.0  ;;  %v3261_v28 = vrot.slane %v1856_v62, 6  ;;  %v908_v33 = vmul.f32 %v3262_v37, %v876_v29  ;;  %v3265_v21 = vld [vmem:[#allocation11_spill] sm:$0xff] }
 0x138   :  { %v3263_v44 = vrot.slane %v1957_v60, 1  ;;  %v3264_v43 = vrot.slane %v1898_v7, 1  ;;  %vm735_vm10 = vcmp.lt.s32.totalorder %v3265_v21, 16  ;;  %v2246_v49 = vadd.f32 %v906_v22, %v801_v19  ;;  %v3350_v21 = vld [vmem:[#allocation9_spill] sm:$0xff] }
 0x139   :  { %v473_v35 = vsel %vm465_vm0, %v3261_v28, %v3260_v39  ;;  %v563_v8 = vadd.f32 %v547_v51, %v1946_v26  ;;  %v803_v54 = vadd.f32 %v787_v63, %v682_v32  ;;  %v3266_v29 = vrot.slane %v1906_v34, 7  ;;  %1126 = vrot.lane.b32.xlu0 %v2139_v38, %s1372_s4 }
 0x13a   :  { %v709_v59 = vsel %vm707_vm3, %v3264_v43, %v3263_v44  ;;  %v517_v53 = vsel %vm488_vm6, %v473_v35, 0.0  ;;  %v3267_v26 = vrot.slane %v1856_v62, 7  ;;  %v668_v0 = vmul.f32 %v1772_v3, %v636_v41  ;;  %v3270_v35 = vld [vmem:[#allocation13_spill] sm:$0xff]  ;;  %1017 = vrot.lane.b32.xlu1 %v2246_v49, %s1371_s3 }
 0x13b   :  { %v549_v39 = vmul.f32 %v1781_v6, %v517_v53  ;;  %v3268_v19 = vrot.slane %v1898_v7, 2  ;;  %v3269_v22 = vrot.slane %v1906_v34, 1  ;;  %vm856_vm11 = vcmp.lt.s32.totalorder %v3270_v35, 16 }
 0x13c   :  { %v594_v51 = vsel %vm586_vm1, %v3267_v26, %v3266_v29  ;;  %v3271_v43 = vrot.slane %v1755_v57, 6  ;;  %v3272_v53 = vrot.slane %v1909_v42, 6  ;;  %v3273_v29 = vrot.slane %v1755_v57, 7 }
 0x13d   :  { %v830_v32 = vsel %vm828_vm4, %v3268_v19, %v3172_v12  ;;  %v638_v63 = vsel %vm609_vm7, %v594_v51, 0.0  ;;  %v711_v28 = vsel %vm707_vm3, %v3269_v22, %v3171_v52  ;;  %v565_v41 = vadd.f32 %v549_v39, %v1953_v20  ;;  %1207 = vrot.lane.b32.xlu0 %v2199_v27, %s1373_s8 }
 0x13e   :  { %v670_v44 = vmul.f32 %v1786_v10, %v638_v63  ;;  %v478_v1 = vsel %vm465_vm0, %v3272_v53, %v3271_v43  ;;  %v3274_v26 = vrot.slane %v1909_v42, 7  ;;  %v684_v19 = vadd.f32 %v668_v0, %v563_v8 }
 0x13f   :  { %v789_v22 = vmul.f32 %v1775_v4, %v709_v59  ;;  %v506_v20 = vsel %vm486_vm8, %v478_v1, 0.0  ;;  %v2294_v63 = vadd.f32 %v908_v33, %v803_v54  ;;  %v791_v43 = vmul.f32 %v1789_v11, %v711_v28  ;;  %v3280_v1 = vld [vmem:[#allocation14_spill] sm:$0xff] }
 0x140   :  { %v599_v51 = vsel %vm586_vm1, %v3274_v26, %v3273_v29  ;;  %v686_v52 = vadd.f32 %v670_v44, %v565_v41  ;;  %v538_v53 = vmul.f32 %v1742_v50, %v506_v20  ;;  %v910_v8 = vmul.f32 %v1778_v5, %v830_v32 }
 0x141   :  { %v627_v39 = vsel %vm607_vm9, %v599_v51, 0.0  ;;  %v3275_v59 = vrot.slane %v1809_v24, 1  ;;  %v3276_v54 = vrot.slane %v1755_v57, 1  ;;  %v3277_v0 = vrot.slane %v1909_v42, 6  ;;  %1223 = vrot.lane.b32.xlu0 %v2139_v38, %s1373_s8  ;;  %1033 = vrot.lane.b32.xlu1 %v2294_v63, %s1371_s3 }
 0x142   :  { %v3278_v28 = vrot.slane %v1859_v9, 6  ;;  %v3279_v44 = vrot.slane %v1906_v34, 2  ;;  %v554_v29 = vadd.f32 %v538_v53, %v3280_v1  ;;  %v659_v26 = vmul.f32 %v1749_v55, %v627_v39 }
 0x143   :  { %v716_v33 = vsel %vm707_vm3, %v3276_v54, %v3275_v59  ;;  %v805_v20 = vadd.f32 %v789_v22, %v684_v19  ;;  %v3281_v59 = vrot.slane %v1909_v42, 7  ;;  %v3282_v54 = vrot.slane %v1859_v9, 7 }
 0x144   :  { %v466_v41 = vsel %vm465_vm0, %v3278_v28, %v3277_v0  ;;  %v832_v32 = vsel %vm828_vm4, %v3279_v44, %v827_v31  ;;  %v3283_v28 = vrot.slane %v1755_v57, 1  ;;  %v3284_v12 = vrot.slane %v1909_v42, 1 }
 0x145   :  { %v550_v51 = vmul.f32 %v1742_v50, %v466_v41  ;;  %v587_v0 = vsel %vm586_vm1, %v3282_v54, %v3281_v59  ;;  %v3285_v53 = vrot.slane %v1762_v61, 6  ;;  %v3286_v39 = vrot.slane %v1923_v18, 6  ;;  %v3287_v41 = vld [vmem:[#allocation18_spill] sm:$0xff]  ;;  %1116 = vrot.lane.b32.xlu1 %v2246_v49, %s1372_s4 }
 0x146   :  { %v720_v44 = vsel %vm707_vm3, %v3284_v12, %v3283_v28  ;;  %v807_v19 = vadd.f32 %v791_v43, %v686_v52  ;;  %v675_v22 = vadd.f32 %v659_v26, %v554_v29  ;;  %v780_v9 = vmul.f32 %v1752_v56, %v716_v33  ;;  %v3293_v28 = vld [vmem:[#allocation7_spill] sm:$0xff] }
 0x147   :  { %v480_v50 = vsel %vm465_vm0, %v3286_v39, %v3285_v53  ;;  %v566_v1 = vadd.f32 %v550_v51, %v3287_v41  ;;  %v3288_v12 = vrot.slane %v1809_v24, 2  ;;  %v3289_v59 = vrot.slane %v1755_v57, 2  ;;  %v3292_v51 = vld [vmem:[#allocation20_spill] sm:$0xff] }
 0x148   :  { %v671_v52 = vmul.f32 %v1749_v55, %v587_v0  ;;  %v3291_v33 = vrot.slane %v1909_v42, 2  ;;  %v508_v26 = vsel %vm486_vm8, %v480_v50, 0.0  ;;  %v2366_v24 = vadd.f32 %v3293_v28, %v3292_v51 }
 0x149   :  { %v837_v54 = vsel %vm828_vm4, %v3289_v59, %v3288_v12  ;;  %v3290_v43 = vmov %v3289_v59  ;;  %v912_v53 = vmul.f32 %v3262_v37, %v832_v32  ;;  %v760_v39 = vsel %vm735_vm10, %v720_v44, 0.0  ;;  %v3296_v59 = vld [vmem:[#allocation8_spill] sm:$0xff]  ;;  %1132 = vrot.lane.b32.xlu1 %v2294_v63, %s1372_s4 }
 0x14a   :  { %v841_v29 = vsel %vm828_vm4, %v3291_v33, %v3290_v43  ;;  %v3294_v55 = vrot.slane %v1762_v61, 7  ;;  %v3295_v57 = vrot.slane %v1923_v18, 7  ;;  %v2377_v0 = vadd.f32 %v910_v8, %v805_v20 }
 0x14b   :  { %v796_v41 = vadd.f32 %v780_v9, %v675_v22  ;;  %v687_v50 = vadd.f32 %v671_v52, %v566_v1  ;;  %v540_v12 = vmul.f32 %v1730_v45, %v508_v26  ;;  %v2382_v43 = vadd.f32 %v3296_v59, %v2216_v23  ;;  %v3301_v52 = vld [vmem:[#allocation15_spill] sm:$0xff] }
 0x14c   :  { %v601_v42 = vsel %vm586_vm1, %v3295_v57, %v3294_v55  ;;  %v2384_v32 = vadd.f32 %v912_v53, %v807_v19  ;;  %v901_v44 = vmul.f32 %v1758_v58, %v837_v54  ;;  %v881_v33 = vsel %vm856_vm11, %v841_v29, 0.0  ;;  %1019 = vrot.lane.b32.xlu0 %v2377_v0, %s1371_s3 }
 0x14d   :  { %v792_v8 = vmul.f32 %v1752_v56, %v760_v39  ;;  %v629_v20 = vsel %vm607_vm9, %v601_v42, 0.0  ;;  %v3297_v23 = vrot.slane %v1829_v16, 1  ;;  %v3298_v19 = vrot.slane %v1762_v61, 1  ;;  %1213 = vrot.lane.b32.xlu1 %v2246_v49, %s1373_s8 }
 0x14e   :  { %v3299_v9 = vrot.slane %v1923_v18, 6  ;;  %v3300_v1 = vrot.slane %v1877_v25, 6  ;;  %v556_v29 = vadd.f32 %v540_v12, %v3301_v52  ;;  %v3302_v26 = vmov %v3295_v57 }
 0x14f   :  { %v718_v22 = vsel %vm707_vm3, %v3298_v19, %v3297_v23  ;;  %v3303_v51 = vrot.slane %v1877_v25, 7  ;;  %v3304_v53 = vmov %v3298_v19  ;;  %v3305_v39 = vrot.slane %v1923_v18, 1  ;;  %v3309_v19 = vld [vmem:[#allocation19_spill] sm:$0xff] }
 0x150   :  { %v468_v54 = vsel %vm465_vm0, %v3300_v1, %v3299_v9  ;;  %v2422_v57 = vadd.f32 %v901_v44, %v796_v41  ;;  %v2424_v42 = vadd.f32 %v792_v8, %v687_v50  ;;  %v3307_v12 = vrot.slane %v1829_v16, 2  ;;  %1035 = vrot.lane.b32.xlu0 %v2384_v32, %s1371_s3 }
 0x151   :  { %v552_v56 = vmul.f32 %v1730_v45, %v468_v54  ;;  %v589_v28 = vsel %vm586_vm1, %v3303_v51, %v3302_v26  ;;  %v722_v55 = vsel %vm707_vm3, %v3305_v39, %v3304_v53  ;;  %v2427_v45 = vmul.f32 %v1758_v58, %v881_v33  ;;  %1229 = vrot.lane.b32.xlu1 %v2294_v63, %s1373_s8 }
 0x152   :  { %3306 = vst [vmem:[#allocation10_spill] sm:$0xff] %v2422_v57  ;;  %v3308_v25 = vrot.slane %v1762_v61, 2  ;;  %v661_v23 = vmul.f32 %v1733_v47, %v629_v20  ;;  %v762_v41 = vsel %vm735_vm10, %v722_v55, 0.0  ;;  %v3310_v50 = vrot.slane %v1795_v13, 6 }
 0x153   :  { %v568_v9 = vadd.f32 %v552_v56, %v3309_v19  ;;  %v3311_v58 = vrot.slane %v1957_v60, 6  ;;  %v782_v44 = vmul.f32 %v1736_v48, %v718_v22  ;;  %v673_v33 = vmul.f32 %v1733_v47, %v589_v28  ;;  %v3320_v19 = vld [vmem:[#allocation16_spill] sm:$0xff] }
 0x154   :  { %v2435_v59 = vsel %vm828_vm4, %v3308_v25, %v3307_v12  ;;  %v3312_v20 = vrot.slane %v1795_v13, 7  ;;  %v3313_v1 = vrot.slane %v1957_v60, 7  ;;  %v677_v52 = vadd.f32 %v661_v23, %v556_v29  ;;  %1118 = vrot.lane.b32.xlu0 %v2377_v0, %s1372_s4 }
 0x155   :  { %v479_v16 = vsel %vm465_vm0, %v3311_v58, %v3310_v50  ;;  %v3314_v22 = vrot.slane %v1848_v30, 1  ;;  %v3315_v47 = vrot.slane %v1795_v13, 1  ;;  %v689_v28 = vadd.f32 %v673_v33, %v568_v9  ;;  %1011 = vrot.lane.b32.xlu1 %v2199_v27, %s1371_s3 }
 0x156   :  { %v507_v8 = vsel %vm486_vm8, %v479_v16, 0.0  ;;  %v600_v54 = vsel %vm586_vm1, %v3313_v1, %v3312_v20  ;;  %v794_v53 = vmul.f32 %v1736_v48, %v762_v41  ;;  %v3316_v39 = vmov %v3308_v25  ;;  %v3321_v41 = vld [vmem:[#allocation12_spill] sm:$0xff] }
 0x157   :  { %v539_v56 = vmul.f32 %v1769_v2, %v507_v8  ;;  %v628_v26 = vsel %vm607_vm9, %v600_v54, 0.0  ;;  %v717_v51 = vsel %vm707_vm3, %v3315_v47, %v3314_v22  ;;  %v3317_v55 = vrot.slane %v1923_v18, 2 }
 0x158   :  { %v3318_v12 = vrot.slane %v1848_v30, 2  ;;  %v3319_v25 = vrot.slane %v1795_v13, 2  ;;  %v660_v9 = vmul.f32 %v1772_v3, %v628_v26  ;;  %v781_v48 = vmul.f32 %v1775_v4, %v717_v51  ;;  %1134 = vrot.lane.b32.xlu0 %v2384_v32, %s1372_s4 }
 0x159   :  { %v843_v29 = vsel %vm828_vm4, %v3317_v55, %v3316_v39  ;;  %v555_v50 = vadd.f32 %v539_v56, %v3320_v19  ;;  %v3322_v61 = vrot.slane %v3321_v41, 6  ;;  %v3323_v18 = vrot.slane %v1986_v46, 6 }
 0x15a   :  { %v838_v23 = vsel %vm828_vm4, %v3319_v25, %v3318_v12  ;;  %v3324_v16 = vrot.slane %v3321_v41, 7  ;;  %v3325_v33 = vrot.slane %v1986_v46, 7  ;;  %v3326_v20 = vrot.slane %v1856_v62, 1 }
 0x15b   :  { %v481_v58 = vsel %vm465_vm0, %v3323_v18, %v3322_v61  ;;  %v3327_v1 = vrot.slane %v3321_v41, 1  ;;  %v3328_v56 = vrot.slane %v1856_v62, 2  ;;  %v3329_v26 = vrot.slane %v3321_v41, 2 }
 0x15c   :  { %v509_v30 = vsel %vm486_vm8, %v481_v58, 0.0  ;;  %v602_v8 = vsel %vm586_vm1, %v3325_v33, %v3324_v16  ;;  %v676_v22 = vadd.f32 %v660_v9, %v555_v50  ;;  %v902_v47 = vmul.f32 %v1778_v5, %v838_v23  ;;  %v3332_v23 = vld [vmem:[#allocation17_spill] sm:$0xff]  ;;  %1215 = vrot.lane.b32.xlu0 %v2377_v0, %s1373_s8 }
 0x15d   :  { %v719_v54 = vsel %vm707_vm3, %v3327_v1, %v3326_v20  ;;  %v840_v14 = vsel %vm828_vm4, %v3329_v26, %v3328_v56  ;;  %v541_v51 = vmul.f32 %v1781_v6, %v509_v30  ;;  %v630_v39 = vsel %vm607_vm9, %v602_v8, 0.0 }
 0x15e   :  { %v662_v55 = vmul.f32 %v1786_v10, %v630_v39  ;;  %v783_v12 = vmul.f32 %v1789_v11, %v719_v54  ;;  %v904_v25 = vmul.f32 %v3262_v37, %v840_v14  ;;  %v3330_v62 = vrot.slane %v1957_v60, 6 }
 0x15f   :  { %v3331_v19 = vrot.slane %v1898_v7, 6  ;;  %v797_v9 = vadd.f32 %v781_v48, %v676_v22  ;;  %v557_v61 = vadd.f32 %v541_v51, %v3332_v23  ;;  %v3334_v58 = vrot.slane %v1898_v7, 7 }
 0x160   :  { %v3335_v48 = vrot.slane %v1795_v13, 1  ;;  %v3336_v33 = vrot.slane %v1957_v60, 1  ;;  %v3337_v7 = vrot.slane %v1795_v13, 2  ;;  %v3338_v8 = vrot.slane %v1957_v60, 2  ;;  %1007 = vrot.lane.b32.xlu0 %v2422_v57, %s1371_s3 }
 0x161   :  { %v467_v50 = vsel %vm465_vm0, %v3331_v19, %v3330_v62  ;;  %v588_v30 = vsel %vm586_vm1, %v3334_v58, %v3333_v15  ;;  %v2554_v1 = vadd.f32 %v902_v47, %v797_v9  ;;  %v678_v54 = vadd.f32 %v662_v55, %v557_v61 }
 0x162   :  { %v551_v18 = vmul.f32 %v1769_v2, %v467_v50  ;;  %v672_v16 = vmul.f32 %v1772_v3, %v588_v30  ;;  %v721_v2 = vsel %vm707_vm3, %v3336_v33, %v3335_v48  ;;  %v842_v20 = vsel %vm828_vm4, %v3338_v8, %v3337_v7  ;;  %v935_v48 = vld [vmem:[%s3148_s5 + $0x10] sm:$0x1f]  ;;  %v933_v7 = vld [vmem:[%s3148_s5] sm:$0x1f]  ;;  %v934_v8 = vld [vmem:[%s3148_s5 + $0x8] sm:$0x1f] }
 0x163   :  { %3339 = vst [vmem:[#allocation11_spill] sm:$0xff] %v2554_v1  ;;  %v761_v3 = vsel %vm735_vm10, %v721_v2, 0.0  ;;  %v882_v14 = vsel %vm856_vm11, %v842_v20, 0.0  ;;  %v3340_v13 = vrot.slane %v1986_v46, 6  ;;  %v3341_v60 = vrot.slane %v1906_v34, 6  ;;  %v3353_v20 = vld [vmem:[#allocation3_spill] sm:$0xff] }
 0x164   :  { %v567_v56 = vadd.f32 %v551_v18, %v2366_v24  ;;  %v793_v26 = vmul.f32 %v1775_v4, %v761_v3  ;;  %v3342_v47 = vrot.slane %v1986_v46, 7  ;;  %v3343_v51 = vrot.slane %v1906_v34, 7  ;;  %v969_v3 = vld [vmem:[%s3149_s6] sm:$0xf] }
 0x165   :  { %v469_v22 = vsel %vm465_vm0, %v3341_v60, %v3340_v13  ;;  %v799_v39 = vadd.f32 %v783_v12, %v678_v54  ;;  %v914_v4 = vmul.f32 %v1778_v5, %v882_v14  ;;  %v883_v19 = vsel %vm856_vm11, %v843_v29, 0.0 }
 0x166   :  { %v590_v24 = vsel %vm586_vm1, %v3343_v51, %v3342_v47  ;;  %v688_v55 = vadd.f32 %v672_v16, %v567_v56  ;;  %v553_v62 = vmul.f32 %v1781_v6, %v469_v22  ;;  %v3344_v50 = vrot.slane %v3321_v41, 1  ;;  %v936_v56 = vld [vmem:[%s3148_s5 + $0x18] sm:$0x1f] }
 0x167   :  { %v674_v34 = vmul.f32 %v1786_v10, %v590_v24  ;;  %v3345_v12 = vrot.slane %v1986_v46, 1  ;;  %v3346_v6 = vrot.slane %v3321_v41, 2  ;;  %v2595_v23 = vadd.f32 %v904_v25, %v799_v39 }
 0x168   :  { %v809_v61 = vadd.f32 %v793_v26, %v688_v55  ;;  %v569_v29 = vadd.f32 %v553_v62, %v2382_v43  ;;  %v2602_v18 = vadd.f32 %v2427_v45, %v2424_v42  ;;  %v798_v15 = vadd.f32 %v782_v44, %v677_v52  ;;  %v3358_v55 = vld [vmem:[#allocation4_spill] sm:$0xff] }
 0x169   :  { %v723_v5 = vsel %vm707_vm3, %v3345_v12, %v3344_v50  ;;  %v844_v9 = vsel %vm828_vm4, %v827_v31, %v3346_v6  ;;  %3347 = vst [vmem:[#allocation13_spill] sm:$0xff] %v2595_v23  ;;  %v810_v58 = vadd.f32 %v794_v53, %v689_v28  ;;  %v903_v43 = vmul.f32 %v3350_v21, %v2435_v59 }
 0x16a   :  { %v763_v10 = vsel %vm735_vm10, %v723_v5, 0.0  ;;  %3348 = vst [vmem:[#allocation14_spill] sm:$0xff] %v2602_v18  ;;  %v884_v46 = vsel %vm856_vm11, %v844_v9, 0.0  ;;  %v2606_v41 = vadd.f32 %v914_v4, %v809_v61  ;;  %v690_v17 = vadd.f32 %v674_v34, %v569_v29  ;;  %1013 = vrot.lane.b32.xlu1 %v2602_v18, %s1371_s3  ;;  %v3359_v34 = vld [vmem:[#allocation2_spill] sm:$0xff]  ;;  %v3360_v5 = vld [vmem:[#allocation5_spill] sm:$0xff] }
 0x16b   :  { %v795_v31 = vmul.f32 %v1789_v11, %v763_v10  ;;  %v915_v42 = vmul.f32 %v3350_v21, %v883_v19  ;;  %v916_v35 = vmul.f32 %v3262_v37, %v884_v46  ;;  %v2617_v44 = vadd.f32 %v903_v43, %v798_v15  ;;  %v3362_v29 = vld [vmem:[#allocation6_spill] sm:$0xff] }
 0x16c   :  { %3349 = vst [vmem:[#allocation18_spill] sm:$0xff] %v2606_v41  ;;  %v2695_v54 = vrot.slane %v935_v48, %v3353_v20  ;;  %v2704_v26 = vrot.slane %v934_v8, %v3353_v20  ;;  %v2707_v14 = vrot.slane %v933_v7, %v3353_v20  ;;  %v3355_v60 = vlaneseq }
 0x16d   :  { %v811_v45 = vadd.f32 %v795_v31, %v690_v17  ;;  %v2619_v52 = vadd.f32 %v915_v42, %v810_v58  ;;  %1023 = vrot.lane.b32.xlu0 %v2617_v44, %s1371_s3  ;;  %v2715_v51 = vrot.slane %v936_v56, %v3353_v20  ;;  %v2720_v39 = vrot.slane %v969_v3, %v3353_v20 }
 0x16e   :  { %3354 = vst [vmem:[#allocation8_spill] sm:$0xff] %v2707_v14  ;;  %v2712_v22 = vand.u32 127, %v3355_v60  ;;  %v959_v24 = vmul.f32 %v2695_v54, %v2067_v36  ;;  %v2723_v4 = vrot.slane %v969_v3, %v3358_v55  ;;  %v958_v62 = vmul.f32 %v2704_v26, %v2246_v49 }
 0x16f   :  { %3351 = vst [vmem:[#allocation20_spill] sm:$0xff] %v2619_v52  ;;  %v2621_v28 = vadd.f32 %v916_v35, %v811_v45  ;;  %1029 = vrot.lane.b32.xlu1 %v2619_v52, %s1371_s3  ;;  %3356 = vst [vmem:[#allocation15_spill] sm:$0xff] %v2715_v51  ;;  %v957_v19 = vmul.f32 %v2707_v14, %v2102_v40  ;;  %v2730_v50 = vrot.slane %v969_v3, %v3359_v34 }
 0x170   :  { %3357 = vst [vmem:[#allocation19_spill] sm:$0xff] %v2720_v39  ;;  %vm1041_vm12 = vcmp.lt.s32.totalorder %v2712_v22, 64  ;;  %v960_v36 = vmul.f32 %v2715_v51, %v2294_v63  ;;  %v2738_v6 = vrot.slane %v969_v3, %v3360_v5  ;;  %vm1138_vm13 = vcmp.lt.s32.totalorder %v2712_v22, 32 }
 0x171   :  { %3352 = vst [vmem:[#allocation7_spill] sm:$0xff] %v2621_v28  ;;  %1106 = vrot.lane.b32.xlu0 %v2422_v57, %s1372_s4  ;;  %v2742_v49 = vadd.f32 %v2720_v39, %v959_v24  ;;  %v2745_v40 = vrot.slane %v934_v8, %v3359_v34  ;;  %v2748_v61 = vrot.slane %v935_v48, %v3359_v34  ;;  %vm1235_vm14 = vcmp.lt.s32.totalorder %v2712_v22, 96 }
 0x172   :  { %3361 = vst [vmem:[#allocation16_spill] sm:$0xff] %v2738_v6  ;;  %v2751_v10 = vrot.slane %v933_v7, %v3362_v29  ;;  %v2754_v63 = vrot.slane %v934_v8, %v3362_v29  ;;  %v2757_v15 = vrot.slane %v933_v7, %v3359_v34  ;;  %v2760_v58 = vrot.slane %v936_v56, %v3359_v34 }
 0x173   :  { %1112 = vrot.lane.b32.xlu1 %v2602_v18, %s1372_s4  ;;  %v963_v46 = vmul.f32 %v2695_v54, %v2139_v38  ;;  %v996_v17 = vadd.f32 %v2723_v4, %v958_v62  ;;  %v995_v31 = vadd.f32 %v2730_v50, %v957_v19  ;;  %v2768_v21 = vrot.slane %v935_v48, %v3362_v29 }
 0x174   :  { %v2771_v43 = vrot.slane %v936_v56, %v3362_v29  ;;  %v998_v45 = vadd.f32 %v2738_v6, %v960_v36  ;;  %v2783_v20 = vrot.slane %v934_v8, %v3358_v55  ;;  %v2792_v24 = vrot.slane %v935_v48, %v3358_v55 }
 0x175   :  { %1122 = vrot.lane.b32.xlu0 %v2617_v44, %s1372_s4  ;;  %v964_v62 = vmul.f32 %v2715_v51, %v2384_v32  ;;  %v1001_v19 = vadd.f32 %v2720_v39, %v963_v46  ;;  %v2804_v36 = vrot.slane %v936_v56, %v3358_v55  ;;  %v2807_v29 = vrot.slane %v933_v7, %v3360_v5 }
 0x176   :  { %v2816_v46 = vrot.slane %v935_v48, %v3360_v5 }
 0x177   :  { %1128 = vrot.lane.b32.xlu1 %v2619_v52, %s1372_s4  ;;  %v1002_v51 = vadd.f32 %v2738_v6, %v964_v62  ;;  %v962_v62 = vmul.f32 %v2704_v26, %v2377_v0 }
 0x179   :  { %1203 = vrot.lane.b32.xlu0 %v2422_v57, %s1373_s8 }
 0x17b   :  { %1209 = vrot.lane.b32.xlu1 %v2602_v18, %s1373_s8  ;;  %v2813_v18 = vrot.slane %v934_v8, %v3360_v5  ;;  %v2829_v8 = vrot.slane %v936_v56, %v3360_v5  ;;  %v961_v5 = vmul.f32 %v2707_v14, %v2199_v27 }
 0x17d   :  { %1219 = vrot.lane.b32.xlu0 %v2617_v44, %s1373_s8 }
 0x17f   :  { %1225 = vrot.lane.b32.xlu1 %v2619_v52, %s1373_s8 }
 0x181   :  { %1015 = vrot.lane.b32.xlu0 %v2554_v1, %s1371_s3 }
 0x183   :  { %1021 = vrot.lane.b32.xlu1 %v2606_v41, %s1371_s3 }
 0x185   :  { %1031 = vrot.lane.b32.xlu0 %v2595_v23, %s1371_s3 }
 0x187   :  { %1037 = vrot.lane.b32.xlu1 %v2621_v28, %s1371_s3 }
 0x189   :  { %1114 = vrot.lane.b32.xlu0 %v2554_v1, %s1372_s4 }
 0x18b   :  { %1120 = vrot.lane.b32.xlu1 %v2606_v41, %s1372_s4 }
 0x18d   :  { %1130 = vrot.lane.b32.xlu0 %v2595_v23, %s1372_s4 }
 0x18f   :  { %1136 = vrot.lane.b32.xlu1 %v2621_v28, %s1372_s4 }
 0x191   :  { %1211 = vrot.lane.b32.xlu0 %v2554_v1, %s1373_s8 }
 0x193   :  { %1217 = vrot.lane.b32.xlu1 %v2606_v41, %s1373_s8 }
 0x194   :  { %v2669_v11 = vpop.permute.xlu1 %1025 }
 0x195   :  { %1227 = vrot.lane.b32.xlu0 %v2595_v23, %s1373_s8 }
 0x197   :  { %1233 = vrot.lane.b32.xlu1 %v2621_v28, %s1373_s8 }
 0x199   :  { %1231 = vrot.lane.b32.xlu0 %v2384_v32, %s1373_s8  ;;  %v1010_v37 = vpop.permute.xlu0 %1009  ;;  %v2671_v59 = vpop.permute.xlu1 %1108 }
 0x19d   :  { %v2675_v25 = vpop.permute.xlu1 %1124 }
 0x19e   :  { %v2673_v53 = vpop.permute.xlu0 %1027 }
 0x1a1   :  { %v2679_v16 = vpop.permute.xlu1 %1205 }
 0x1a5   :  { %v2686_v2 = vpop.permute.xlu1 %1221 }
 0x1a7   :  { %v2677_v30 = vpop.permute.xlu0 %1110 }
 0x1ab   :  { %v2684_v33 = vpop.permute.xlu0 %1126 }
 0x1ac   :  { %v1018_v47 = vpop.permute.xlu1 %1017 }
 0x1ad   :  { %v1051_v42 = vsel %vm1041_vm12, %v1010_v37, %v1018_v47  ;;  %v1047_v39 = vsel %vm1041_vm12, %v1018_v47, %v2669_v11 }
 0x1ae   :  { %v1079_v28 = vmul.f32 %v2745_v40, %v1051_v42 }
 0x1af   :  { %v2709_v13 = vpop.permute.xlu0 %1207 }
 0x1b0   :  { %v1095_v6 = vadd.f32 %v1079_v28, %v996_v17 }
 0x1b3   :  { %v2733_v12 = vpop.permute.xlu0 %1223  ;;  %v1034_v9 = vpop.permute.xlu1 %1033 }
 0x1b4   :  { %v2778_v38 = vsel %vm1041_vm12, %v1034_v9, %v1010_v37  ;;  %v2797_v37 = vrot.slane %v933_v7, %v3358_v55  ;;  %v1043_v7 = vsel %vm1041_vm12, %v2669_v11, %v1034_v9 }
 0x1b5   :  { %v1078_v32 = vmul.f32 %v2757_v15, %v2778_v38 }
 0x1b7   :  { %v1117_v3 = vpop.permute.xlu1 %1116  ;;  %v1094_v23 = vadd.f32 %v1078_v32, %v995_v31 }
 0x1b8   :  { %v1148_v34 = vsel %vm1138_vm13, %v2671_v59, %v1117_v3 }
 0x1b9   :  { %v1176_v48 = vmul.f32 %v2783_v20, %v1148_v34  ;;  %v1080_v34 = vmul.f32 %v2748_v61, %v1047_v39 }
 0x1bb   :  { %v1133_v52 = vpop.permute.xlu1 %1132  ;;  %v1192_v1 = vadd.f32 %v1176_v48, %v1095_v6  ;;  %v1320_v6 = vmul.f32 %v2751_v10, %v1051_v42 }
 0x1bc   :  { %v1152_v11 = vsel %vm1138_vm13, %v1133_v52, %v2671_v59  ;;  %v1144_v59 = vsel %vm1138_vm13, %v1117_v3, %v2675_v25  ;;  %v1321_v3 = vmul.f32 %v2754_v63, %v1047_v39 }
 0x1bd   :  { %v1175_v56 = vmul.f32 %v2797_v37, %v1152_v11  ;;  %v1140_v11 = vsel %vm1138_vm13, %v2675_v25, %v1133_v52 }
 0x1be   :  { %v2780_v35 = vpop.permute.xlu0 %1019  ;;  %v1178_v32 = vmul.f32 %v2804_v36, %v1140_v11  ;;  %v999_v11 = vadd.f32 %v2730_v50, %v961_v5 }
 0x1bf   :  { %v2789_v60 = vsel %vm1041_vm12, %v2780_v35, %v2673_v53  ;;  %v1214_v14 = vpop.permute.xlu1 %1213 }
 0x1c0   :  { %v1084_v55 = vmul.f32 %v2748_v61, %v2789_v60  ;;  %v1241_v28 = vsel %vm1235_vm14, %v1214_v14, %v2686_v2  ;;  %v1245_v17 = vsel %vm1235_vm14, %v2679_v16, %v1214_v14 }
 0x1c1   :  { %v1272_v52 = vmul.f32 %v2807_v29, %v1245_v17  ;;  %v1273_v25 = vmul.f32 %v2813_v18, %v1241_v28  ;;  %v1000_v17 = vadd.f32 %v2723_v4, %v962_v62 }
 0x1c2   :  { %v2826_v41 = vpop.permute.xlu0 %1035  ;;  %v1100_v57 = vadd.f32 %v1084_v55, %v1001_v19  ;;  %v1177_v19 = vmul.f32 %v2792_v24, %v1144_v59  ;;  %v1096_v55 = vadd.f32 %v1080_v34, %v2742_v49 }
 0x1c3   :  { %v2837_v47 = vsel %vm1041_vm12, %v2673_v53, %v2826_v41  ;;  %v1081_v53 = vmul.f32 %v2760_v58, %v1043_v7 }
 0x1c4   :  { %3363 = vst [vmem:[#allocation12_spill] sm:$0xff] %v2837_v47  ;;  %v1085_v9 = vmul.f32 %v2760_v58, %v2837_v47 }
 0x1c6   :  { %v1101_v47 = vadd.f32 %v1085_v9, %v1002_v51  ;;  %v1119_v27 = vpop.permute.xlu0 %1118  ;;  %v1191_v51 = vadd.f32 %v1175_v56, %v1094_v23  ;;  %v1289_v23 = vadd.f32 %v1273_v25, %v1192_v1  ;;  %v1230_v56 = vpop.permute.xlu1 %1229  ;;  %v1193_v1 = vadd.f32 %v1177_v19, %v1096_v55 }
 0x1c7   :  { %v1145_v0 = vsel %vm1138_vm13, %v1119_v27, %v2684_v33  ;;  %v1237_v39 = vsel %vm1235_vm14, %v2686_v2, %v1230_v56  ;;  %v1249_v42 = vsel %vm1235_vm14, %v1230_v56, %v2679_v16 }
 0x1c8   :  { %v1181_v31 = vmul.f32 %v2792_v24, %v1145_v0  ;;  %v1288_v14 = vadd.f32 %v1272_v52, %v1191_v51  ;;  %v1097_v0 = vadd.f32 %v1081_v53, %v998_v45  ;;  %v1274_v45 = vmul.f32 %v2816_v46, %v1237_v39 }
 0x1c9   :  { %v1275_v53 = vmul.f32 %v2829_v8, %v1249_v42  ;;  %v1322_v51 = vmul.f32 %v2768_v21, %v1043_v7 }
 0x1ca   :  { %v2874_v48 = vadd.f32 %v1181_v31, %v1100_v57  ;;  %v1135_v9 = vpop.permute.xlu0 %1134  ;;  %v1336_v49 = vadd.f32 %v1320_v6, %v1288_v14  ;;  %v1337_v57 = vadd.f32 %v1321_v3, %v1289_v23  ;;  %v1194_v59 = vadd.f32 %v1178_v32, %v1097_v0  ;;  %v1012_v2 = vpop.permute.xlu1 %1011 }
 0x1cb   :  { %v1141_v28 = vsel %vm1138_vm13, %v2684_v33, %v1135_v9  ;;  %v1323_v31 = vmul.f32 %v2771_v43, %v2778_v38  ;;  %v1290_v52 = vadd.f32 %v1274_v45, %v1193_v1  ;;  %v1149_v6 = vsel %vm1138_vm13, %v2677_v30, %v1119_v27 }
 0x1cc   :  { %v1182_v34 = vmul.f32 %v2804_v36, %v1141_v28  ;;  %1352 = vst [vmem:[%s3150_s7 + $0x20] sm:$0xff] %v1336_v49  ;;  %1353 = vst [vmem:[%s3150_s7 + $0x28] sm:$0xff] %v1337_v57  ;;  %v1291_v25 = vadd.f32 %v1275_v53, %v1194_v59  ;;  %v1052_v5 = vsel %vm1041_vm12, %v1012_v2, %v2780_v35 }
 0x1cd   :  { %v2913_v7 = vsel %vm1041_vm12, %v2826_v41, %v1012_v2  ;;  %v1338_v38 = vadd.f32 %v1322_v51, %v1290_v52  ;;  %v1083_v27 = vmul.f32 %v2745_v40, %v1052_v5  ;;  %v1180_v41 = vmul.f32 %v2783_v20, %v1149_v6  ;;  %v3364_v6 = vld [vmem:[#allocation11_spill] sm:$0xff] }
 0x1ce   :  { %v2894_v33 = vadd.f32 %v1182_v34, %v1101_v47  ;;  %v1216_v16 = vpop.permute.xlu0 %1215  ;;  %v1153_v47 = vsel %vm1138_vm13, %v1135_v9, %v2677_v30  ;;  %v1339_v62 = vadd.f32 %v1323_v31, %v1291_v25  ;;  %v1082_v3 = vmul.f32 %v2757_v15, %v2913_v7 }
 0x1cf   :  { %v1242_v30 = vsel %vm1235_vm14, %v1216_v16, %v2733_v12  ;;  %v1246_v35 = vsel %vm1235_vm14, %v2709_v13, %v1216_v16  ;;  %v1179_v55 = vmul.f32 %v2797_v37, %v1153_v47  ;;  %1354 = vst [vmem:[%s3150_s7 + $0x30] sm:$0xff] %v1338_v38  ;;  %v1099_v23 = vadd.f32 %v1083_v27, %v1000_v17  ;;  %v3365_v38 = vld [vmem:[#allocation10_spill] sm:$0xff]  ;;  %v3367_v27 = vld [vmem:[#allocation13_spill] sm:$0xff] }
 0x1d0   :  { %1355 = vst [vmem:[%s3150_s7 + $0x38] sm:$0xff] %v1339_v62  ;;  %v1098_v14 = vadd.f32 %v1082_v3, %v999_v11  ;;  %v1276_v9 = vmul.f32 %v2807_v29, %v1246_v35  ;;  %v1277_v56 = vmul.f32 %v2813_v18, %v1242_v30  ;;  %v1325_v49 = vmul.f32 %v2754_v63, %v2789_v60  ;;  %v3366_v62 = vld [vmem:[#allocation8_spill] sm:$0xff]  ;;  %v3368_v30 = vld [vmem:[#allocation15_spill] sm:$0xff] }
 0x1d1   :  { %v1196_v28 = vadd.f32 %v1180_v41, %v1099_v23  ;;  %v1324_v1 = vmul.f32 %v2751_v10, %v1052_v5  ;;  %v955_v52 = vmul.f32 %v2695_v54, %v2617_v44  ;;  %v954_v47 = vmul.f32 %v2704_v26, %v3364_v6  ;;  %v3369_v41 = vld [vmem:[#allocation20_spill] sm:$0xff] }
 0x1d2   :  { %v1008_v19 = vpop.permute.xlu0 %1007  ;;  %v1195_v0 = vadd.f32 %v1179_v55, %v1098_v14  ;;  %v953_v3 = vmul.f32 %v3366_v62, %v3365_v38  ;;  %v956_v35 = vmul.f32 %v3368_v30, %v3367_v27  ;;  %v967_v55 = vmul.f32 %v2695_v54, %v3369_v41  ;;  %v3370_v14 = vld [vmem:[#allocation18_spill] sm:$0xff]  ;;  %v3374_v38 = vld [vmem:[#allocation16_spill] sm:$0xff] }
 0x1d3   :  { %v1293_v34 = vadd.f32 %v1277_v56, %v1196_v28  ;;  %v966_v23 = vmul.f32 %v2704_v26, %v3370_v14  ;;  %v3372_v56 = vld [vmem:[#allocation7_spill] sm:$0xff] }
 0x1d4   :  { %v1292_v57 = vadd.f32 %v1276_v9, %v1195_v0  ;;  %v3371_v9 = vld [vmem:[#allocation14_spill] sm:$0xff]  ;;  %v968_v0 = vmul.f32 %v3368_v30, %v3372_v56  ;;  %v991_v6 = vadd.f32 %v2730_v50, %v953_v3 }
 0x1d5   :  { %v1341_v45 = vadd.f32 %v1325_v49, %v1293_v34  ;;  %v965_v44 = vmul.f32 %v3366_v62, %v3371_v9  ;;  %v994_v62 = vadd.f32 %v3374_v38, %v956_v35 }
 0x1d6   :  { %v1340_v59 = vadd.f32 %v1324_v1, %v1292_v57  ;;  %v3373_v57 = vld [vmem:[#allocation19_spill] sm:$0xff]  ;;  %v992_v1 = vadd.f32 %v2723_v4, %v954_v47  ;;  %v1006_v41 = vadd.f32 %v3374_v38, %v968_v0 }
 0x1d7   :  { %1357 = vst [vmem:[%s3150_s7 + $0x48] sm:$0xff] %v1341_v45  ;;  %v993_v34 = vadd.f32 %v3373_v57, %v955_v52  ;;  %v1005_v27 = vadd.f32 %v3373_v57, %v967_v55  ;;  %v1003_v30 = vadd.f32 %v2730_v50, %v965_v44 }
 0x1d8   :  { %1356 = vst [vmem:[%s3150_s7 + $0x40] sm:$0xff] %v1340_v59 }
 0x1dc   :  { %v2924_v32 = vpop.permute.xlu1 %1013 }
 0x1df   :  { %v1024_v39 = vpop.permute.xlu0 %1023 }
 0x1e1   :  { %v1030_v42 = vpop.permute.xlu1 %1029 }
 0x1e3   :  { %v2939_v53 = vpop.permute.xlu0 %1106 }
 0x1e5   :  { %v2941_v16 = vpop.permute.xlu1 %1112 }
 0x1e7   :  { %v1123_v2 = vpop.permute.xlu0 %1122 }
 0x1e9   :  { %v2949_v60 = vpop.permute.xlu1 %1128 }
 0x1eb   :  { %v2951_v11 = vpop.permute.xlu0 %1203 }
 0x1ed   :  { %v2953_v17 = vpop.permute.xlu1 %1209 }
 0x1ef   :  { %v2955_v51 = vpop.permute.xlu0 %1219 }
 0x1f1   :  { %v2957_v31 = vpop.permute.xlu1 %1225 }
 0x1f3   :  { %v1016_v25 = vpop.permute.xlu0 %1015 }
 0x1f4   :  { %v1046_v28 = vsel %vm1041_vm12, %v1016_v25, %v1024_v39  ;;  %v1050_v49 = vsel %vm1041_vm12, %v1008_v19, %v1016_v25  ;;  %v1004_v25 = vadd.f32 %v2723_v4, %v966_v23 }
 0x1f5   :  { %v1022_v5 = vpop.permute.xlu1 %1021  ;;  %v1075_v52 = vmul.f32 %v2745_v40, %v1050_v49  ;;  %v1076_v47 = vmul.f32 %v2748_v61, %v1046_v28  ;;  %v3001_v4 = vmul.f32 %v2751_v10, %v1050_v49  ;;  %v3004_v14 = vmul.f32 %v2754_v63, %v1046_v28 }
 0x1f6   :  { %v1049_v26 = vsel %vm1041_vm12, %v1022_v5, %v1030_v42  ;;  %v1053_v59 = vsel %vm1041_vm12, %v2924_v32, %v1022_v5 }
 0x1f7   :  { %v1032_v54 = vpop.permute.xlu0 %1031  ;;  %v1087_v35 = vmul.f32 %v2745_v40, %v1053_v59  ;;  %v1088_v55 = vmul.f32 %v2748_v61, %v1049_v26  ;;  %v1328_v40 = vmul.f32 %v2751_v10, %v1053_v59  ;;  %v1329_v61 = vmul.f32 %v2754_v63, %v1049_v26 }
 0x1f8   :  { %v1042_v5 = vsel %vm1041_vm12, %v1024_v39, %v1032_v54  ;;  %v1054_v3 = vsel %vm1041_vm12, %v1032_v54, %v1008_v19  ;;  %v1091_v56 = vadd.f32 %v1075_v52, %v992_v1 }
 0x1f9   :  { %v1038_v45 = vpop.permute.xlu1 %1037  ;;  %v1074_v0 = vmul.f32 %v2757_v15, %v1054_v3  ;;  %v1077_v28 = vmul.f32 %v2760_v58, %v1042_v5  ;;  %v3024_v49 = vadd.f32 %v1088_v55, %v1005_v27  ;;  %v3031_v57 = vmul.f32 %v2768_v21, %v1042_v5 }
 0x1fa   :  { %v3008_v50 = vsel %vm1041_vm12, %v1030_v42, %v1038_v45  ;;  %v3013_v39 = vsel %vm1041_vm12, %v1038_v45, %v2924_v32  ;;  %v1092_v42 = vadd.f32 %v1076_v47, %v993_v34  ;;  %v1103_v32 = vadd.f32 %v1087_v35, %v1004_v25 }
 0x1fb   :  { %v1115_v23 = vpop.permute.xlu0 %1114  ;;  %v1086_v10 = vmul.f32 %v2757_v15, %v3013_v39  ;;  %v1089_v63 = vmul.f32 %v2760_v58, %v3008_v50  ;;  %v1090_v27 = vadd.f32 %v1074_v0, %v991_v6  ;;  %v1093_v25 = vadd.f32 %v1077_v28, %v994_v62 }
 0x1fc   :  { %v1143_v9 = vsel %vm1138_vm13, %v1115_v23, %v1123_v2  ;;  %v1147_v44 = vsel %vm1138_vm13, %v2939_v53, %v1115_v23  ;;  %v1319_v52 = vmul.f32 %v2771_v43, %v1054_v3 }
 0x1fd   :  { %v1121_v19 = vpop.permute.xlu1 %1120  ;;  %v1172_v54 = vmul.f32 %v2783_v20, %v1147_v44  ;;  %v1173_v34 = vmul.f32 %v2792_v24, %v1143_v9  ;;  %v1102_v5 = vadd.f32 %v1086_v10, %v1003_v30 }
 0x1fe   :  { %v1150_v26 = vsel %vm1138_vm13, %v2941_v16, %v1121_v19  ;;  %v1146_v58 = vsel %vm1138_vm13, %v1121_v19, %v2949_v60 }
 0x1ff   :  { %v1131_v1 = vpop.permute.xlu0 %1130  ;;  %v1184_v35 = vmul.f32 %v2783_v20, %v1150_v26  ;;  %v1188_v55 = vadd.f32 %v1172_v54, %v1091_v56  ;;  %v1189_v23 = vadd.f32 %v1173_v34, %v1092_v42  ;;  %v1185_v9 = vmul.f32 %v2792_v24, %v1146_v58 }
 0x200   :  { %v1139_v45 = vsel %vm1138_vm13, %v1123_v2, %v1131_v1  ;;  %v1151_v15 = vsel %vm1138_vm13, %v1131_v1, %v2939_v53  ;;  %v1105_v2 = vadd.f32 %v1089_v63, %v1006_v41 }
 0x201   :  { %v1137_v59 = vpop.permute.xlu1 %1136  ;;  %v1171_v47 = vmul.f32 %v2797_v37, %v1151_v15  ;;  %v1174_v19 = vmul.f32 %v2804_v36, %v1139_v45  ;;  %v1200_v56 = vadd.f32 %v1184_v35, %v1103_v32 }
 0x202   :  { %v1154_v38 = vsel %vm1138_vm13, %v1137_v59, %v2941_v16  ;;  %v1142_v20 = vsel %vm1138_vm13, %v2949_v60, %v1137_v59 }
 0x203   :  { %v1183_v53 = vmul.f32 %v2797_v37, %v1154_v38  ;;  %v1212_v44 = vpop.permute.xlu0 %1211  ;;  %v1187_v6 = vadd.f32 %v1171_v47, %v1090_v27  ;;  %v1190_v10 = vadd.f32 %v1174_v19, %v1093_v25  ;;  %v1186_v54 = vmul.f32 %v2804_v36, %v1142_v20 }
 0x204   :  { %v1240_v62 = vsel %vm1235_vm14, %v1212_v44, %v2955_v51  ;;  %v1244_v30 = vsel %vm1235_vm14, %v2951_v11, %v1212_v44 }
 0x205   :  { %v1218_v16 = vpop.permute.xlu1 %1217  ;;  %v1268_v37 = vmul.f32 %v2807_v29, %v1244_v30  ;;  %v1269_v41 = vmul.f32 %v2813_v18, %v1240_v62  ;;  %v1199_v42 = vadd.f32 %v1183_v53, %v1102_v5  ;;  %v1202_v25 = vadd.f32 %v1186_v54, %v1105_v2 }
 0x206   :  { %v1243_v24 = vsel %vm1235_vm14, %v1218_v16, %v2957_v31  ;;  %v1247_v3 = vsel %vm1235_vm14, %v2953_v17, %v1218_v16  ;;  %v1330_v53 = vmul.f32 %v2768_v21, %v3008_v50 }
 0x207   :  { %v1280_v0 = vmul.f32 %v2807_v29, %v1247_v3  ;;  %v1281_v28 = vmul.f32 %v2813_v18, %v1243_v24  ;;  %v1284_v60 = vadd.f32 %v1268_v37, %v1187_v6  ;;  %v1285_v63 = vadd.f32 %v1269_v41, %v1188_v55  ;;  %v1228_v34 = vpop.permute.xlu0 %1227 }
 0x208   :  { %v1236_v26 = vsel %vm1235_vm14, %v2955_v51, %v1228_v34  ;;  %v1248_v32 = vsel %vm1235_vm14, %v1228_v34, %v2951_v11  ;;  %v1331_v55 = vmul.f32 %v2771_v43, %v3013_v39 }
 0x209   :  { %v1234_v1 = vpop.permute.xlu1 %1233  ;;  %v1296_v59 = vadd.f32 %v1280_v0, %v1199_v42  ;;  %v1297_v45 = vadd.f32 %v1281_v28, %v1200_v56  ;;  %v1332_v29 = vadd.f32 %v3001_v4, %v1284_v60  ;;  %v1333_v18 = vadd.f32 %v3004_v14, %v1285_v63 }
 0x20a   :  { %v1270_v15 = vmul.f32 %v2816_v46, %v1236_v26  ;;  %v1271_v36 = vmul.f32 %v2829_v8, %v1248_v32  ;;  %v1239_v51 = vsel %vm1235_vm14, %v2957_v31, %v1234_v1  ;;  %v1251_v11 = vsel %vm1235_vm14, %v1234_v1, %v2953_v17 }
 0x20b   :  { %v1344_v58 = vadd.f32 %v1328_v40, %v1296_v59  ;;  %v1345_v38 = vadd.f32 %v1329_v61, %v1297_v45  ;;  %1348 = vst [vmem:[%s3150_s7] sm:$0xff] %v1332_v29  ;;  %1349 = vst [vmem:[%s3150_s7 + $0x8] sm:$0xff] %v1333_v18  ;;  %v1232_v40 = vpop.permute.xlu0 %1231  ;;  %v1282_v61 = vmul.f32 %v2816_v46, %v1239_v51 }
 0x20c   :  { %v1286_v4 = vadd.f32 %v1270_v15, %v1189_v23  ;;  %v1287_v14 = vadd.f32 %v1271_v36, %v1190_v10  ;;  %v1283_v27 = vmul.f32 %v2829_v8, %v1251_v11  ;;  %v1201_v31 = vadd.f32 %v1185_v9, %v3024_v49 }
 0x20d   :  { %1360 = vst [vmem:[%s3150_s7 + $0x60] sm:$0xff] %v1344_v58  ;;  %1361 = vst [vmem:[%s3150_s7 + $0x68] sm:$0xff] %v1345_v38  ;;  %v1238_v17 = vsel %vm1235_vm14, %v2733_v12, %v1232_v40  ;;  %v1250_v47 = vsel %vm1235_vm14, %v1232_v40, %v2709_v13  ;;  %v3375_v12 = vld [vmem:[#allocation12_spill] sm:$0xff]  ;;  %v1327_v13 = vmul.f32 %v2771_v43, %v2913_v7 }
 0x20e   :  { %v1334_v5 = vadd.f32 %v3031_v57, %v1286_v4  ;;  %v1335_v49 = vadd.f32 %v1319_v52, %v1287_v14  ;;  %v1278_v2 = vmul.f32 %v2816_v46, %v1238_v17  ;;  %v1279_v35 = vmul.f32 %v2829_v8, %v1250_v47 }
 0x20f   :  { %v1298_v23 = vadd.f32 %v1282_v61, %v1201_v31  ;;  %v1299_v19 = vadd.f32 %v1283_v27, %v1202_v25  ;;  %v1326_v9 = vmul.f32 %v2768_v21, %v3375_v12 }
 0x210   :  { %1350 = vst [vmem:[%s3150_s7 + $0x10] sm:$0xff] %v1334_v5  ;;  %1351 = vst [vmem:[%s3150_s7 + $0x18] sm:$0xff] %v1335_v49  ;;  %v1294_v22 = vadd.f32 %v1278_v2, %v2874_v48  ;;  %v1295_v46 = vadd.f32 %v1279_v35, %v2894_v33 }
 0x211   :  { %v1346_v8 = vadd.f32 %v1330_v53, %v1298_v23  ;;  %v1347_v50 = vadd.f32 %v1331_v55, %v1299_v19 }
 0x212   :  { %v1342_v39 = vadd.f32 %v1326_v9, %v1294_v22  ;;  %v1343_v57 = vadd.f32 %v1327_v13, %v1295_v46 }
 0x213   :  { %1362 = vst [vmem:[%s3150_s7 + $0x70] sm:$0xff] %v1346_v8  ;;  %1363 = vst [vmem:[%s3150_s7 + $0x78] sm:$0xff] %v1347_v50 }
 0x214   :  { %1358 = vst [vmem:[%s3150_s7 + $0x50] sm:$0xff] %v1342_v39  ;;  %1359 = vst [vmem:[%s3150_s7 + $0x58] sm:$0xff] %v1343_v57 }

</bundles_post_ra>
